<compile_context>
chip_gen: v7x
topology: tpu7x:2x2x1
jax: 0.10.0
libtpu: 0.0.40
codegen_flags: <defaults>
</compile_context>

<pallas_src>
import math

import jax
import jax.numpy as jnp
from jax.experimental import pallas as pl
from jax.experimental.pallas import tpu as pltpu

OU_DRIFT_COEF = 0.1
DIFF_COEF = math.sqrt(2.0)
INV_DIFF_COEF = 1.0 / DIFF_COEF
START_TIME = 0.0
END_TIME = 3.0
NUM_T = 100                                   # 100 time points -> 99 EM steps
NSTEPS = NUM_T - 1
DT = (END_TIME - START_TIME) / (NUM_T - 1)
SQRT_DT = math.sqrt(DT)
HIDDEN = 32                                   # hidden width of the drift MLP f_func

CHUNK_STEPS = 8                               # EM steps per grid chunk (sublane aligned)
NUM_CHUNKS = -(-NSTEPS // CHUNK_STEPS)        # 13
NSTEPS_PAD = NUM_CHUNKS * CHUNK_STEPS         # 104 (5 masked phantom steps)
LANE = 128


def _sde_em_kernel(z0_ref, noise_ref, w1z_ref, w1t_ref, b1_ref, w2_ref, b2_ref,
                   zpath_ref, kl_ref, z_ref):
    """One (sample-block, time-chunk) grid step of the Euler-Maruyama solver.

    z0_ref    : (1, SBLK)            initial state for this sample block
    noise_ref : (CHUNK_STEPS, SBLK)  standard-normal draws for this time chunk
    w1z/w1t/b1/w2 : (H, 1)           drift-MLP params (column layout)
    b2_ref    : (1, 1)
    zpath_ref : (CHUNK_STEPS, SBLK)  output path rows s_{base+1} .. s_{base+CHUNK}
    kl_ref    : (1, SBLK)            KL accumulator (resident output block)
    z_ref     : (1, SBLK)            VMEM scratch: state carried across chunks
    """
    t_chunk = pl.program_id(1)

    @pl.when(t_chunk == 0)
    def _init():
        z_ref[...] = z0_ref[...]
        kl_ref[...] = jnp.zeros_like(kl_ref)

    # Loop-invariant loads, hoisted out of the unrolled step loop.
    w1z = w1z_ref[...]                       # (H, 1)
    w1t = w1t_ref[...]                       # (H, 1)
    b1 = b1_ref[...]                         # (H, 1)
    w2 = w2_ref[...]                         # (H, 1)
    b2 = b2_ref[...]                         # (1, 1)
    noise = noise_ref[...]                   # (CHUNK_STEPS, SBLK)

    z = z_ref[...]                           # (1, SBLK)
    kl = kl_ref[...]                         # (1, SBLK)

    base = t_chunk * CHUNK_STEPS
    rows = []
    for j in range(CHUNK_STEPS):             # statically unrolled
        i = base + j
        valid = i < NSTEPS                   # phantom padding steps get dt = 0
        dt = jnp.where(valid, jnp.float32(DT), jnp.float32(0.0))
        sq_dt = jnp.where(valid, jnp.float32(SQRT_DT), jnp.float32(0.0))
        t0 = i.astype(jnp.float32) * jnp.float32(DT) + jnp.float32(START_TIME)

        # Posterior drift f(t0, z): tanh MLP on [z, t0].
        # Hidden kept as (H, N): H on sublanes, samples dense on lanes.
        h = jnp.tanh(w1z * z + (t0 * w1t + b1))                  # (H, SBLK)
        f_t = jnp.sum(h * w2, axis=0, keepdims=True) + b2        # (1, SBLK)

        # Euler-Maruyama update (g_t = DIFF_COEF constant).
        z = z + f_t * dt + noise[j:j + 1, :] * (DIFF_COEF * sq_dt)
        rows.append(z)

        # KL term: prior drift -ou*z evaluated at the UPDATED z; /g folded to constant.
        u = (f_t + OU_DRIFT_COEF * z) * INV_DIFF_COEF
        kl = kl + (0.5 * dt) * (u * u)

    zpath_ref[...] = jnp.concatenate(rows, axis=0)   # one dense (CHUNK, SBLK) store
    z_ref[...] = z
    kl_ref[...] = kl


def _pick_sample_block(n_pad):
    for cand in (512, 256, 128):
        if n_pad % cand == 0:
            return cand
    return 128


@jax.jit
def sde_em_pallas(z0, noise, w1, b1, w2, b2):
    """z0: (nsamples,) f32, noise: (NSTEPS, nsamples) f32 standard normals."""
    nsamples = z0.shape[0]
    n_pad = -(-nsamples // LANE) * LANE
    sblk = _pick_sample_block(n_pad)
    n_sample_blocks = n_pad // sblk

    # Lane-dense, zero-padded layouts.
    z0_p = jnp.zeros((1, n_pad), jnp.float32).at[0, :nsamples].set(z0.astype(jnp.float32))
    noise_p = jnp.zeros((NSTEPS_PAD, n_pad), jnp.float32).at[:NSTEPS, :nsamples].set(
        noise.astype(jnp.float32))

    w1z = w1[0].reshape(HIDDEN, 1).astype(jnp.float32)
    w1t = w1[1].reshape(HIDDEN, 1).astype(jnp.float32)
    b1c = b1.reshape(HIDDEN, 1).astype(jnp.float32)
    w2c = w2.reshape(HIDDEN, 1).astype(jnp.float32)
    b2c = b2.reshape(1, 1).astype(jnp.float32)

    zpath_body, kl = pl.pallas_call(
        _sde_em_kernel,
        grid=(n_sample_blocks, NUM_CHUNKS),
        in_specs=[
            pl.BlockSpec((1, sblk), lambda s, t: (0, s)),             # z0
            pl.BlockSpec((CHUNK_STEPS, sblk), lambda s, t: (t, s)),   # noise chunk
            pl.BlockSpec((HIDDEN, 1), lambda s, t: (0, 0)),           # w1z
            pl.BlockSpec((HIDDEN, 1), lambda s, t: (0, 0)),           # w1t
            pl.BlockSpec((HIDDEN, 1), lambda s, t: (0, 0)),           # b1
            pl.BlockSpec((HIDDEN, 1), lambda s, t: (0, 0)),           # w2
            pl.BlockSpec((1, 1), lambda s, t: (0, 0)),                # b2
        ],
        out_specs=(
            pl.BlockSpec((CHUNK_STEPS, sblk), lambda s, t: (t, s)),   # path chunk
            pl.BlockSpec((1, sblk), lambda s, t: (0, s)),             # kl (resident)
        ),
        out_shape=(
            jax.ShapeDtypeStruct((NSTEPS_PAD, n_pad), jnp.float32),
            jax.ShapeDtypeStruct((1, n_pad), jnp.float32),
        ),
        scratch_shapes=[pltpu.VMEM((1, sblk), jnp.float32)],          # z carry
        compiler_params=pltpu.CompilerParams(
            dimension_semantics=("parallel", "arbitrary")),
    )(z0_p, noise_p, w1z, w1t, b1c, w2c, b2c)

    # zpath_body[k] = state after step k (s_{k+1}); prepend z0 row, drop phantom rows.
    z_path = jnp.concatenate([z0_p, zpath_body[:NSTEPS]], axis=0)     # (NUM_T, n_pad)
    z_path = z_path[:, :nsamples].reshape(NUM_T, nsamples, 1)
    kldiv = kl[0, :nsamples].reshape(nsamples, 1)
    return z_path, kldiv


def init_drift_params(key, hidden=HIDDEN):
    """Deterministic parameters for f_func: Linear(2->H) -> tanh -> Linear(H->1)."""
    k1, k2, k3, k4 = jax.random.split(key, 4)
    w1 = jax.random.normal(k1, (2, hidden), jnp.float32) * (1.0 / math.sqrt(2.0))
    b1 = jax.random.normal(k2, (hidden,), jnp.float32) * 0.1
    w2 = jax.random.normal(k3, (hidden, 1), jnp.float32) * (1.0 / math.sqrt(hidden))
    b2 = jax.random.normal(k4, (1,), jnp.float32) * 0.1
    return w1, b1, w2, b2


def variational_sde_forward(nsamples, key, params):
    """Mirrors VariationalSDE.forward(nsamples) -> (z_path, kldiv)."""
    # TODO(synk): noise is drawn host-side with jax.random (not torch.randn / in-kernel PRNG).
    k0, k1 = jax.random.split(key)
    z0 = jax.random.normal(k0, (nsamples,), jnp.float32) * 3.0
    noise = jax.random.normal(k1, (NSTEPS, nsamples), jnp.float32)
    return sde_em_pallas(z0, noise, *params)


def reference_forward(z0, noise, params):
    """Pure-JAX mirror of em_solver for correctness checking (same noise / z0)."""
    w1, b1, w2, b2 = params
    z = z0.reshape(-1, 1).astype(jnp.float32)
    kl = jnp.zeros_like(z)
    zs = [z]
    dt = jnp.float32(DT)
    for i in range(NSTEPS):
        t0 = jnp.float32(i) * dt + jnp.float32(START_TIME)
        h = jnp.tanh(z * w1[0] + t0 * w1[1] + b1)                    # (N, H)
        f_t = jnp.sum(h * w2[:, 0], axis=-1, keepdims=True) + b2     # (N, 1)
        dW = noise[i].reshape(-1, 1) * jnp.sqrt(dt)
        z = z + f_t * dt + DIFF_COEF * dW
        zs.append(z)
        u = (f_t - (-OU_DRIFT_COEF * z)) / DIFF_COEF
        kl = kl + dt * jnp.abs(u * u) * 0.5
    return jnp.stack(zs, axis=0), kl


if __name__ == "__main__":
    key = jax.random.PRNGKey(0)
    param_key, z_key, noise_key = jax.random.split(key, 3)

    params = init_drift_params(param_key)
    nsamples = 8

    z0 = jax.random.normal(z_key, (nsamples,), jnp.float32) * 3.0
    noise = jax.random.normal(noise_key, (NSTEPS, nsamples), jnp.float32)

    z_path, kldiv = sde_em_pallas(z0, noise, *params)
    jax.block_until_ready((z_path, kldiv))

    assert z_path.shape == (NUM_T, nsamples, 1)
    assert kldiv.shape == (nsamples, 1)
    assert bool(jnp.all(jnp.isfinite(z_path))) and bool(jnp.all(jnp.isfinite(kldiv)))

    # Correctness vs a pure-JAX reference with identical discretization / noise.
    z_ref, kl_ref = reference_forward(z0, noise, params)
    z_err = float(jnp.max(jnp.abs(z_path - z_ref))) / (1.0 + float(jnp.max(jnp.abs(z_ref))))
    k_err = float(jnp.max(jnp.abs(kldiv - kl_ref))) / (1.0 + float(jnp.max(jnp.abs(kl_ref))))
    assert z_err < 5e-2 and k_err < 5e-2, (z_err, k_err)

    print("KERNEL_OK")
</pallas_src>

<mosaic_0001>
module attributes {stable_mosaic.version = 11 : i64} {
  func.func @_sde_em_kernel(%arg0: i32, %arg1: i32, %arg2: memref<1x128xf32, #tpu.memory_space<vmem>>, %arg3: memref<8x128xf32, #tpu.memory_space<vmem>>, %arg4: memref<32x1xf32, #tpu.memory_space<vmem>>, %arg5: memref<32x1xf32, #tpu.memory_space<vmem>>, %arg6: memref<32x1xf32, #tpu.memory_space<vmem>>, %arg7: memref<32x1xf32, #tpu.memory_space<vmem>>, %arg8: memref<1x1xf32, #tpu.memory_space<vmem>>, %arg9: memref<8x128xf32, #tpu.memory_space<vmem>>, %arg10: memref<1x128xf32, #tpu.memory_space<vmem>>, %arg11: memref<1x128xf32, #tpu.memory_space<vmem>>) attributes {dimension_semantics = [#tpu.dimension_semantics<parallel>, #tpu.dimension_semantics<arbitrary>], iteration_bounds = array<i64: 1, 13>, scalar_prefetch = 0 : i64, scratch_operands = 1 : i64, tpu.core_type = #tpu.core_type<tc>, window_params = [{transform_indices = @transform_0, window_bounds = array<i64: 1, 128>}, {transform_indices = @transform_1, window_bounds = array<i64: 8, 128>}, {pipeline_mode = #tpu.pipeline_mode<synchronous>, transform_indices = @transform_2, window_bounds = array<i64: 32, 1>}, {pipeline_mode = #tpu.pipeline_mode<synchronous>, transform_indices = @transform_3, window_bounds = array<i64: 32, 1>}, {pipeline_mode = #tpu.pipeline_mode<synchronous>, transform_indices = @transform_4, window_bounds = array<i64: 32, 1>}, {pipeline_mode = #tpu.pipeline_mode<synchronous>, transform_indices = @transform_5, window_bounds = array<i64: 32, 1>}, {pipeline_mode = #tpu.pipeline_mode<synchronous>, transform_indices = @transform_6, window_bounds = array<i64: 1, 1>}, {transform_indices = @transform_7, window_bounds = array<i64: 8, 128>}, {transform_indices = @transform_8, window_bounds = array<i64: 1, 128>}]} {
    %c0_i32 = arith.constant 0 : i32
    %0 = arith.cmpi eq, %arg1, %c0_i32 : i32
    %1 = arith.extui %0 : i1 to i32
    %c0_i32_0 = arith.constant 0 : i32
    %2 = arith.cmpi ne, %1, %c0_i32_0 : i32
    scf.if %2 {
      %c0_117 = arith.constant 0 : index
      %c0_118 = arith.constant 0 : index
      %336 = vector.load %arg2[%c0_117, %c0_118] : memref<1x128xf32, #tpu.memory_space<vmem>>, vector<1x128xf32>
      %c0_119 = arith.constant 0 : index
      %c0_120 = arith.constant 0 : index
      %337 = vector.load %arg11[%c0_119, %c0_120] : memref<1x128xf32, #tpu.memory_space<vmem>>, vector<1x128xf32>
      tpu.vector_store %arg11[%c0_119, %c0_120], %336 {strides = array<i32>} : memref<1x128xf32, #tpu.memory_space<vmem>>, vector<1x128xf32>,
      %cst_121 = arith.constant 0.000000e+00 : f32
      %338 = vector.broadcast %cst_121 : f32 to vector<1x128xf32>
      %c0_122 = arith.constant 0 : index
      %c0_123 = arith.constant 0 : index
      %339 = vector.load %arg10[%c0_122, %c0_123] : memref<1x128xf32, #tpu.memory_space<vmem>>, vector<1x128xf32>
      tpu.vector_store %arg10[%c0_122, %c0_123], %338 {strides = array<i32>} : memref<1x128xf32, #tpu.memory_space<vmem>>, vector<1x128xf32>,
    } else {
    }
    %c0 = arith.constant 0 : index
    %c0_1 = arith.constant 0 : index
    %3 = vector.load %arg4[%c0, %c0_1] : memref<32x1xf32, #tpu.memory_space<vmem>>, vector<32x1xf32>
    %c0_2 = arith.constant 0 : index
    %c0_3 = arith.constant 0 : index
    %4 = vector.load %arg5[%c0_2, %c0_3] : memref<32x1xf32, #tpu.memory_space<vmem>>, vector<32x1xf32>
    %c0_4 = arith.constant 0 : index
    %c0_5 = arith.constant 0 : index
    %5 = vector.load %arg6[%c0_4, %c0_5] : memref<32x1xf32, #tpu.memory_space<vmem>>, vector<32x1xf32>
    %c0_6 = arith.constant 0 : index
    %c0_7 = arith.constant 0 : index
    %6 = vector.load %arg7[%c0_6, %c0_7] : memref<32x1xf32, #tpu.memory_space<vmem>>, vector<32x1xf32>
    %c0_8 = arith.constant 0 : index
    %c0_9 = arith.constant 0 : index
    %7 = vector.load %arg8[%c0_8, %c0_9] : memref<1x1xf32, #tpu.memory_space<vmem>>, vector<1x1xf32>
    %c0_10 = arith.constant 0 : index
    %c0_11 = arith.constant 0 : index
    %8 = vector.load %arg3[%c0_10, %c0_11] : memref<8x128xf32, #tpu.memory_space<vmem>>, vector<8x128xf32>
    %c0_12 = arith.constant 0 : index
    %c0_13 = arith.constant 0 : index
    %9 = vector.load %arg11[%c0_12, %c0_13] : memref<1x128xf32, #tpu.memory_space<vmem>>, vector<1x128xf32>
    %c0_14 = arith.constant 0 : index
    %c0_15 = arith.constant 0 : index
    %10 = vector.load %arg10[%c0_14, %c0_15] : memref<1x128xf32, #tpu.memory_space<vmem>>, vector<1x128xf32>
    %c8_i32 = arith.constant 8 : i32
    %11 = arith.muli %arg1, %c8_i32 : i32
    %c0_i32_16 = arith.constant 0 : i32
    %12 = arith.addi %11, %c0_i32_16 : i32
    %c99_i32 = arith.constant 99 : i32
    %13 = arith.cmpi slt, %12, %c99_i32 : i32
    %cst = arith.constant 0.0303030312 : f32
    %cst_17 = arith.constant 0.000000e+00 : f32
    %14 = arith.select %13, %cst, %cst_17 : f32
    %cst_18 = arith.constant 0.17407766 : f32
    %cst_19 = arith.constant 0.000000e+00 : f32
    %15 = arith.select %13, %cst_18, %cst_19 : f32
    %16 = arith.sitofp %12 : i32 to f32
    %cst_20 = arith.constant 0.0303030312 : f32
    %17 = arith.mulf %16, %cst_20 : f32
    %cst_21 = arith.constant 0.000000e+00 : f32
    %18 = arith.addf %17, %cst_21 : f32
    %19 = vector.broadcast %3 : vector<32x1xf32> to vector<32x128xf32>
    %20 = vector.broadcast %9 : vector<1x128xf32> to vector<32x128xf32>
    %21 = arith.mulf %19, %20 : vector<32x128xf32>
    %22 = vector.broadcast %18 : f32 to vector<32x1xf32>
    %23 = arith.mulf %22, %4 : vector<32x1xf32>
    %24 = arith.addf %23, %5 : vector<32x1xf32>
    %25 = vector.broadcast %24 : vector<32x1xf32> to vector<32x128xf32>
    %26 = arith.addf %21, %25 : vector<32x128xf32>
    %27 = math.tanh %26 : vector<32x128xf32>
    %28 = vector.broadcast %6 : vector<32x1xf32> to vector<32x128xf32>
    %29 = arith.mulf %27, %28 : vector<32x128xf32>
    %cst_22 = arith.constant dense<0.000000e+00> : vector<128xf32>
    %30 = vector.multi_reduction <add>, %29, %cst_22 [0] : vector<32x128xf32> to vector<128xf32>
    %31 = vector.shape_cast %30 : vector<128xf32> to vector<1x128xf32>
    %32 = vector.broadcast %7 : vector<1x1xf32> to vector<1x128xf32>
    %33 = arith.addf %31, %32 : vector<1x128xf32>
    %34 = vector.broadcast %14 : f32 to vector<1x128xf32>
    %35 = arith.mulf %33, %34 : vector<1x128xf32>
    %36 = arith.addf %9, %35 : vector<1x128xf32>
    %37 = vector.extract_strided_slice %8 {offsets = [0, 0], sizes = [1, 128], strides = [1, 1]} : vector<8x128xf32> to vector<1x128xf32>
    %cst_23 = arith.constant 1.41421354 : f32
    %38 = arith.mulf %cst_23, %15 : f32
    %39 = vector.broadcast %38 : f32 to vector<1x128xf32>
    %40 = arith.mulf %37, %39 : vector<1x128xf32>
    %41 = arith.addf %36, %40 : vector<1x128xf32>
    %cst_24 = arith.constant 1.000000e-01 : f32
    %42 = vector.broadcast %cst_24 : f32 to vector<1x128xf32>
    %43 = arith.mulf %42, %41 : vector<1x128xf32>
    %44 = arith.addf %33, %43 : vector<1x128xf32>
    %cst_25 = arith.constant 0.707106769 : f32
    %45 = vector.broadcast %cst_25 : f32 to vector<1x128xf32>
    %46 = arith.mulf %44, %45 : vector<1x128xf32>
    %cst_26 = arith.constant 5.000000e-01 : f32
    %47 = arith.mulf %cst_26, %14 : f32
    %48 = arith.mulf %46, %46 : vector<1x128xf32>
    %49 = vector.broadcast %47 : f32 to vector<1x128xf32>
    %50 = arith.mulf %49, %48 : vector<1x128xf32>
    %51 = arith.addf %10, %50 : vector<1x128xf32>
    %c1_i32 = arith.constant 1 : i32
    %52 = arith.addi %11, %c1_i32 : i32
    %c99_i32_27 = arith.constant 99 : i32
    %53 = arith.cmpi slt, %52, %c99_i32_27 : i32
    %cst_28 = arith.constant 0.0303030312 : f32
    %cst_29 = arith.constant 0.000000e+00 : f32
    %54 = arith.select %53, %cst_28, %cst_29 : f32
    %cst_30 = arith.constant 0.17407766 : f32
    %cst_31 = arith.constant 0.000000e+00 : f32
    %55 = arith.select %53, %cst_30, %cst_31 : f32
    %56 = arith.sitofp %52 : i32 to f32
    %cst_32 = arith.constant 0.0303030312 : f32
    %57 = arith.mulf %56, %cst_32 : f32
    %cst_33 = arith.constant 0.000000e+00 : f32
    %58 = arith.addf %57, %cst_33 : f32
    %59 = vector.broadcast %3 : vector<32x1xf32> to vector<32x128xf32>
    %60 = vector.broadcast %41 : vector<1x128xf32> to vector<32x128xf32>
    %61 = arith.mulf %59, %60 : vector<32x128xf32>
    %62 = vector.broadcast %58 : f32 to vector<32x1xf32>
    %63 = arith.mulf %62, %4 : vector<32x1xf32>
    %64 = arith.addf %63, %5 : vector<32x1xf32>
    %65 = vector.broadcast %64 : vector<32x1xf32> to vector<32x128xf32>
    %66 = arith.addf %61, %65 : vector<32x128xf32>
    %67 = math.tanh %66 : vector<32x128xf32>
    %68 = vector.broadcast %6 : vector<32x1xf32> to vector<32x128xf32>
    %69 = arith.mulf %67, %68 : vector<32x128xf32>
    %cst_34 = arith.constant dense<0.000000e+00> : vector<128xf32>
    %70 = vector.multi_reduction <add>, %69, %cst_34 [0] : vector<32x128xf32> to vector<128xf32>
    %71 = vector.shape_cast %70 : vector<128xf32> to vector<1x128xf32>
    %72 = vector.broadcast %7 : vector<1x1xf32> to vector<1x128xf32>
    %73 = arith.addf %71, %72 : vector<1x128xf32>
    %74 = vector.broadcast %54 : f32 to vector<1x128xf32>
    %75 = arith.mulf %73, %74 : vector<1x128xf32>
    %76 = arith.addf %41, %75 : vector<1x128xf32>
    %77 = vector.extract_strided_slice %8 {offsets = [1, 0], sizes = [1, 128], strides = [1, 1]} : vector<8x128xf32> to vector<1x128xf32>
    %cst_35 = arith.constant 1.41421354 : f32
    %78 = arith.mulf %cst_35, %55 : f32
    %79 = vector.broadcast %78 : f32 to vector<1x128xf32>
    %80 = arith.mulf %77, %79 : vector<1x128xf32>
    %81 = arith.addf %76, %80 : vector<1x128xf32>
    %cst_36 = arith.constant 1.000000e-01 : f32
    %82 = vector.broadcast %cst_36 : f32 to vector<1x128xf32>
    %83 = arith.mulf %82, %81 : vector<1x128xf32>
    %84 = arith.addf %73, %83 : vector<1x128xf32>
    %cst_37 = arith.constant 0.707106769 : f32
    %85 = vector.broadcast %cst_37 : f32 to vector<1x128xf32>
    %86 = arith.mulf %84, %85 : vector<1x128xf32>
    %cst_38 = arith.constant 5.000000e-01 : f32
    %87 = arith.mulf %cst_38, %54 : f32
    %88 = arith.mulf %86, %86 : vector<1x128xf32>
    %89 = vector.broadcast %87 : f32 to vector<1x128xf32>
    %90 = arith.mulf %89, %88 : vector<1x128xf32>
    %91 = arith.addf %51, %90 : vector<1x128xf32>
    %c2_i32 = arith.constant 2 : i32
    %92 = arith.addi %11, %c2_i32 : i32
    %c99_i32_39 = arith.constant 99 : i32
    %93 = arith.cmpi slt, %92, %c99_i32_39 : i32
    %cst_40 = arith.constant 0.0303030312 : f32
    %cst_41 = arith.constant 0.000000e+00 : f32
    %94 = arith.select %93, %cst_40, %cst_41 : f32
    %cst_42 = arith.constant 0.17407766 : f32
    %cst_43 = arith.constant 0.000000e+00 : f32
    %95 = arith.select %93, %cst_42, %cst_43 : f32
    %96 = arith.sitofp %92 : i32 to f32
    %cst_44 = arith.constant 0.0303030312 : f32
    %97 = arith.mulf %96, %cst_44 : f32
    %cst_45 = arith.constant 0.000000e+00 : f32
    %98 = arith.addf %97, %cst_45 : f32
    %99 = vector.broadcast %3 : vector<32x1xf32> to vector<32x128xf32>
    %100 = vector.broadcast %81 : vector<1x128xf32> to vector<32x128xf32>
    %101 = arith.mulf %99, %100 : vector<32x128xf32>
    %102 = vector.broadcast %98 : f32 to vector<32x1xf32>
    %103 = arith.mulf %102, %4 : vector<32x1xf32>
    %104 = arith.addf %103, %5 : vector<32x1xf32>
    %105 = vector.broadcast %104 : vector<32x1xf32> to vector<32x128xf32>
    %106 = arith.addf %101, %105 : vector<32x128xf32>
    %107 = math.tanh %106 : vector<32x128xf32>
    %108 = vector.broadcast %6 : vector<32x1xf32> to vector<32x128xf32>
    %109 = arith.mulf %107, %108 : vector<32x128xf32>
    %cst_46 = arith.constant dense<0.000000e+00> : vector<128xf32>
    %110 = vector.multi_reduction <add>, %109, %cst_46 [0] : vector<32x128xf32> to vector<128xf32>
    %111 = vector.shape_cast %110 : vector<128xf32> to vector<1x128xf32>
    %112 = vector.broadcast %7 : vector<1x1xf32> to vector<1x128xf32>
    %113 = arith.addf %111, %112 : vector<1x128xf32>
    %114 = vector.broadcast %94 : f32 to vector<1x128xf32>
    %115 = arith.mulf %113, %114 : vector<1x128xf32>
    %116 = arith.addf %81, %115 : vector<1x128xf32>
    %117 = vector.extract_strided_slice %8 {offsets = [2, 0], sizes = [1, 128], strides = [1, 1]} : vector<8x128xf32> to vector<1x128xf32>
    %cst_47 = arith.constant 1.41421354 : f32
    %118 = arith.mulf %cst_47, %95 : f32
    %119 = vector.broadcast %118 : f32 to vector<1x128xf32>
    %120 = arith.mulf %117, %119 : vector<1x128xf32>
    %121 = arith.addf %116, %120 : vector<1x128xf32>
    %cst_48 = arith.constant 1.000000e-01 : f32
    %122 = vector.broadcast %cst_48 : f32 to vector<1x128xf32>
    %123 = arith.mulf %122, %121 : vector<1x128xf32>
    %124 = arith.addf %113, %123 : vector<1x128xf32>
    %cst_49 = arith.constant 0.707106769 : f32
    %125 = vector.broadcast %cst_49 : f32 to vector<1x128xf32>
    %126 = arith.mulf %124, %125 : vector<1x128xf32>
    %cst_50 = arith.constant 5.000000e-01 : f32
    %127 = arith.mulf %cst_50, %94 : f32
    %128 = arith.mulf %126, %126 : vector<1x128xf32>
    %129 = vector.broadcast %127 : f32 to vector<1x128xf32>
    %130 = arith.mulf %129, %128 : vector<1x128xf32>
    %131 = arith.addf %91, %130 : vector<1x128xf32>
    %c3_i32 = arith.constant 3 : i32
    %132 = arith.addi %11, %c3_i32 : i32
    %c99_i32_51 = arith.constant 99 : i32
    %133 = arith.cmpi slt, %132, %c99_i32_51 : i32
    %cst_52 = arith.constant 0.0303030312 : f32
    %cst_53 = arith.constant 0.000000e+00 : f32
    %134 = arith.select %133, %cst_52, %cst_53 : f32
    %cst_54 = arith.constant 0.17407766 : f32
    %cst_55 = arith.constant 0.000000e+00 : f32
    %135 = arith.select %133, %cst_54, %cst_55 : f32
    %136 = arith.sitofp %132 : i32 to f32
    %cst_56 = arith.constant 0.0303030312 : f32
    %137 = arith.mulf %136, %cst_56 : f32
    %cst_57 = arith.constant 0.000000e+00 : f32
    %138 = arith.addf %137, %cst_57 : f32
    %139 = vector.broadcast %3 : vector<32x1xf32> to vector<32x128xf32>
    %140 = vector.broadcast %121 : vector<1x128xf32> to vector<32x128xf32>
    %141 = arith.mulf %139, %140 : vector<32x128xf32>
    %142 = vector.broadcast %138 : f32 to vector<32x1xf32>
    %143 = arith.mulf %142, %4 : vector<32x1xf32>
    %144 = arith.addf %143, %5 : vector<32x1xf32>
    %145 = vector.broadcast %144 : vector<32x1xf32> to vector<32x128xf32>
    %146 = arith.addf %141, %145 : vector<32x128xf32>
    %147 = math.tanh %146 : vector<32x128xf32>
    %148 = vector.broadcast %6 : vector<32x1xf32> to vector<32x128xf32>
    %149 = arith.mulf %147, %148 : vector<32x128xf32>
    %cst_58 = arith.constant dense<0.000000e+00> : vector<128xf32>
    %150 = vector.multi_reduction <add>, %149, %cst_58 [0] : vector<32x128xf32> to vector<128xf32>
    %151 = vector.shape_cast %150 : vector<128xf32> to vector<1x128xf32>
    %152 = vector.broadcast %7 : vector<1x1xf32> to vector<1x128xf32>
    %153 = arith.addf %151, %152 : vector<1x128xf32>
    %154 = vector.broadcast %134 : f32 to vector<1x128xf32>
    %155 = arith.mulf %153, %154 : vector<1x128xf32>
    %156 = arith.addf %121, %155 : vector<1x128xf32>
    %157 = vector.extract_strided_slice %8 {offsets = [3, 0], sizes = [1, 128], strides = [1, 1]} : vector<8x128xf32> to vector<1x128xf32>
    %cst_59 = arith.constant 1.41421354 : f32
    %158 = arith.mulf %cst_59, %135 : f32
    %159 = vector.broadcast %158 : f32 to vector<1x128xf32>
    %160 = arith.mulf %157, %159 : vector<1x128xf32>
    %161 = arith.addf %156, %160 : vector<1x128xf32>
    %cst_60 = arith.constant 1.000000e-01 : f32
    %162 = vector.broadcast %cst_60 : f32 to vector<1x128xf32>
    %163 = arith.mulf %162, %161 : vector<1x128xf32>
    %164 = arith.addf %153, %163 : vector<1x128xf32>
    %cst_61 = arith.constant 0.707106769 : f32
    %165 = vector.broadcast %cst_61 : f32 to vector<1x128xf32>
    %166 = arith.mulf %164, %165 : vector<1x128xf32>
    %cst_62 = arith.constant 5.000000e-01 : f32
    %167 = arith.mulf %cst_62, %134 : f32
    %168 = arith.mulf %166, %166 : vector<1x128xf32>
    %169 = vector.broadcast %167 : f32 to vector<1x128xf32>
    %170 = arith.mulf %169, %168 : vector<1x128xf32>
    %171 = arith.addf %131, %170 : vector<1x128xf32>
    %c4_i32 = arith.constant 4 : i32
    %172 = arith.addi %11, %c4_i32 : i32
    %c99_i32_63 = arith.constant 99 : i32
    %173 = arith.cmpi slt, %172, %c99_i32_63 : i32
    %cst_64 = arith.constant 0.0303030312 : f32
    %cst_65 = arith.constant 0.000000e+00 : f32
    %174 = arith.select %173, %cst_64, %cst_65 : f32
    %cst_66 = arith.constant 0.17407766 : f32
    %cst_67 = arith.constant 0.000000e+00 : f32
    %175 = arith.select %173, %cst_66, %cst_67 : f32
    %176 = arith.sitofp %172 : i32 to f32
    %cst_68 = arith.constant 0.0303030312 : f32
    %177 = arith.mulf %176, %cst_68 : f32
    %cst_69 = arith.constant 0.000000e+00 : f32
    %178 = arith.addf %177, %cst_69 : f32
    %179 = vector.broadcast %3 : vector<32x1xf32> to vector<32x128xf32>
    %180 = vector.broadcast %161 : vector<1x128xf32> to vector<32x128xf32>
    %181 = arith.mulf %179, %180 : vector<32x128xf32>
    %182 = vector.broadcast %178 : f32 to vector<32x1xf32>
    %183 = arith.mulf %182, %4 : vector<32x1xf32>
    %184 = arith.addf %183, %5 : vector<32x1xf32>
    %185 = vector.broadcast %184 : vector<32x1xf32> to vector<32x128xf32>
    %186 = arith.addf %181, %185 : vector<32x128xf32>
    %187 = math.tanh %186 : vector<32x128xf32>
    %188 = vector.broadcast %6 : vector<32x1xf32> to vector<32x128xf32>
    %189 = arith.mulf %187, %188 : vector<32x128xf32>
    %cst_70 = arith.constant dense<0.000000e+00> : vector<128xf32>
    %190 = vector.multi_reduction <add>, %189, %cst_70 [0] : vector<32x128xf32> to vector<128xf32>
    %191 = vector.shape_cast %190 : vector<128xf32> to vector<1x128xf32>
    %192 = vector.broadcast %7 : vector<1x1xf32> to vector<1x128xf32>
    %193 = arith.addf %191, %192 : vector<1x128xf32>
    %194 = vector.broadcast %174 : f32 to vector<1x128xf32>
    %195 = arith.mulf %193, %194 : vector<1x128xf32>
    %196 = arith.addf %161, %195 : vector<1x128xf32>
    %197 = vector.extract_strided_slice %8 {offsets = [4, 0], sizes = [1, 128], strides = [1, 1]} : vector<8x128xf32> to vector<1x128xf32>
    %cst_71 = arith.constant 1.41421354 : f32
    %198 = arith.mulf %cst_71, %175 : f32
    %199 = vector.broadcast %198 : f32 to vector<1x128xf32>
    %200 = arith.mulf %197, %199 : vector<1x128xf32>
    %201 = arith.addf %196, %200 : vector<1x128xf32>
    %cst_72 = arith.constant 1.000000e-01 : f32
    %202 = vector.broadcast %cst_72 : f32 to vector<1x128xf32>
    %203 = arith.mulf %202, %201 : vector<1x128xf32>
    %204 = arith.addf %193, %203 : vector<1x128xf32>
    %cst_73 = arith.constant 0.707106769 : f32
    %205 = vector.broadcast %cst_73 : f32 to vector<1x128xf32>
    %206 = arith.mulf %204, %205 : vector<1x128xf32>
    %cst_74 = arith.constant 5.000000e-01 : f32
    %207 = arith.mulf %cst_74, %174 : f32
    %208 = arith.mulf %206, %206 : vector<1x128xf32>
    %209 = vector.broadcast %207 : f32 to vector<1x128xf32>
    %210 = arith.mulf %209, %208 : vector<1x128xf32>
    %211 = arith.addf %171, %210 : vector<1x128xf32>
    %c5_i32 = arith.constant 5 : i32
    %212 = arith.addi %11, %c5_i32 : i32
    %c99_i32_75 = arith.constant 99 : i32
    %213 = arith.cmpi slt, %212, %c99_i32_75 : i32
    %cst_76 = arith.constant 0.0303030312 : f32
    %cst_77 = arith.constant 0.000000e+00 : f32
    %214 = arith.select %213, %cst_76, %cst_77 : f32
    %cst_78 = arith.constant 0.17407766 : f32
    %cst_79 = arith.constant 0.000000e+00 : f32
    %215 = arith.select %213, %cst_78, %cst_79 : f32
    %216 = arith.sitofp %212 : i32 to f32
    %cst_80 = arith.constant 0.0303030312 : f32
    %217 = arith.mulf %216, %cst_80 : f32
    %cst_81 = arith.constant 0.000000e+00 : f32
    %218 = arith.addf %217, %cst_81 : f32
    %219 = vector.broadcast %3 : vector<32x1xf32> to vector<32x128xf32>
    %220 = vector.broadcast %201 : vector<1x128xf32> to vector<32x128xf32>
    %221 = arith.mulf %219, %220 : vector<32x128xf32>
    %222 = vector.broadcast %218 : f32 to vector<32x1xf32>
    %223 = arith.mulf %222, %4 : vector<32x1xf32>
    %224 = arith.addf %223, %5 : vector<32x1xf32>
    %225 = vector.broadcast %224 : vector<32x1xf32> to vector<32x128xf32>
    %226 = arith.addf %221, %225 : vector<32x128xf32>
    %227 = math.tanh %226 : vector<32x128xf32>
    %228 = vector.broadcast %6 : vector<32x1xf32> to vector<32x128xf32>
    %229 = arith.mulf %227, %228 : vector<32x128xf32>
    %cst_82 = arith.constant dense<0.000000e+00> : vector<128xf32>
    %230 = vector.multi_reduction <add>, %229, %cst_82 [0] : vector<32x128xf32> to vector<128xf32>
    %231 = vector.shape_cast %230 : vector<128xf32> to vector<1x128xf32>
    %232 = vector.broadcast %7 : vector<1x1xf32> to vector<1x128xf32>
    %233 = arith.addf %231, %232 : vector<1x128xf32>
    %234 = vector.broadcast %214 : f32 to vector<1x128xf32>
    %235 = arith.mulf %233, %234 : vector<1x128xf32>
    %236 = arith.addf %201, %235 : vector<1x128xf32>
    %237 = vector.extract_strided_slice %8 {offsets = [5, 0], sizes = [1, 128], strides = [1, 1]} : vector<8x128xf32> to vector<1x128xf32>
    %cst_83 = arith.constant 1.41421354 : f32
    %238 = arith.mulf %cst_83, %215 : f32
    %239 = vector.broadcast %238 : f32 to vector<1x128xf32>
    %240 = arith.mulf %237, %239 : vector<1x128xf32>
    %241 = arith.addf %236, %240 : vector<1x128xf32>
    %cst_84 = arith.constant 1.000000e-01 : f32
    %242 = vector.broadcast %cst_84 : f32 to vector<1x128xf32>
    %243 = arith.mulf %242, %241 : vector<1x128xf32>
    %244 = arith.addf %233, %243 : vector<1x128xf32>
    %cst_85 = arith.constant 0.707106769 : f32
    %245 = vector.broadcast %cst_85 : f32 to vector<1x128xf32>
    %246 = arith.mulf %244, %245 : vector<1x128xf32>
    %cst_86 = arith.constant 5.000000e-01 : f32
    %247 = arith.mulf %cst_86, %214 : f32
    %248 = arith.mulf %246, %246 : vector<1x128xf32>
    %249 = vector.broadcast %247 : f32 to vector<1x128xf32>
    %250 = arith.mulf %249, %248 : vector<1x128xf32>
    %251 = arith.addf %211, %250 : vector<1x128xf32>
    %c6_i32 = arith.constant 6 : i32
    %252 = arith.addi %11, %c6_i32 : i32
    %c99_i32_87 = arith.constant 99 : i32
    %253 = arith.cmpi slt, %252, %c99_i32_87 : i32
    %cst_88 = arith.constant 0.0303030312 : f32
    %cst_89 = arith.constant 0.000000e+00 : f32
    %254 = arith.select %253, %cst_88, %cst_89 : f32
    %cst_90 = arith.constant 0.17407766 : f32
    %cst_91 = arith.constant 0.000000e+00 : f32
    %255 = arith.select %253, %cst_90, %cst_91 : f32
    %256 = arith.sitofp %252 : i32 to f32
    %cst_92 = arith.constant 0.0303030312 : f32
    %257 = arith.mulf %256, %cst_92 : f32
    %cst_93 = arith.constant 0.000000e+00 : f32
    %258 = arith.addf %257, %cst_93 : f32
    %259 = vector.broadcast %3 : vector<32x1xf32> to vector<32x128xf32>
    %260 = vector.broadcast %241 : vector<1x128xf32> to vector<32x128xf32>
    %261 = arith.mulf %259, %260 : vector<32x128xf32>
    %262 = vector.broadcast %258 : f32 to vector<32x1xf32>
    %263 = arith.mulf %262, %4 : vector<32x1xf32>
    %264 = arith.addf %263, %5 : vector<32x1xf32>
    %265 = vector.broadcast %264 : vector<32x1xf32> to vector<32x128xf32>
    %266 = arith.addf %261, %265 : vector<32x128xf32>
    %267 = math.tanh %266 : vector<32x128xf32>
    %268 = vector.broadcast %6 : vector<32x1xf32> to vector<32x128xf32>
    %269 = arith.mulf %267, %268 : vector<32x128xf32>
    %cst_94 = arith.constant dense<0.000000e+00> : vector<128xf32>
    %270 = vector.multi_reduction <add>, %269, %cst_94 [0] : vector<32x128xf32> to vector<128xf32>
    %271 = vector.shape_cast %270 : vector<128xf32> to vector<1x128xf32>
    %272 = vector.broadcast %7 : vector<1x1xf32> to vector<1x128xf32>
    %273 = arith.addf %271, %272 : vector<1x128xf32>
    %274 = vector.broadcast %254 : f32 to vector<1x128xf32>
    %275 = arith.mulf %273, %274 : vector<1x128xf32>
    %276 = arith.addf %241, %275 : vector<1x128xf32>
    %277 = vector.extract_strided_slice %8 {offsets = [6, 0], sizes = [1, 128], strides = [1, 1]} : vector<8x128xf32> to vector<1x128xf32>
    %cst_95 = arith.constant 1.41421354 : f32
    %278 = arith.mulf %cst_95, %255 : f32
    %279 = vector.broadcast %278 : f32 to vector<1x128xf32>
    %280 = arith.mulf %277, %279 : vector<1x128xf32>
    %281 = arith.addf %276, %280 : vector<1x128xf32>
    %cst_96 = arith.constant 1.000000e-01 : f32
    %282 = vector.broadcast %cst_96 : f32 to vector<1x128xf32>
    %283 = arith.mulf %282, %281 : vector<1x128xf32>
    %284 = arith.addf %273, %283 : vector<1x128xf32>
    %cst_97 = arith.constant 0.707106769 : f32
    %285 = vector.broadcast %cst_97 : f32 to vector<1x128xf32>
    %286 = arith.mulf %284, %285 : vector<1x128xf32>
    %cst_98 = arith.constant 5.000000e-01 : f32
    %287 = arith.mulf %cst_98, %254 : f32
    %288 = arith.mulf %286, %286 : vector<1x128xf32>
    %289 = vector.broadcast %287 : f32 to vector<1x128xf32>
    %290 = arith.mulf %289, %288 : vector<1x128xf32>
    %291 = arith.addf %251, %290 : vector<1x128xf32>
    %c7_i32 = arith.constant 7 : i32
    %292 = arith.addi %11, %c7_i32 : i32
    %c99_i32_99 = arith.constant 99 : i32
    %293 = arith.cmpi slt, %292, %c99_i32_99 : i32
    %cst_100 = arith.constant 0.0303030312 : f32
    %cst_101 = arith.constant 0.000000e+00 : f32
    %294 = arith.select %293, %cst_100, %cst_101 : f32
    %cst_102 = arith.constant 0.17407766 : f32
    %cst_103 = arith.constant 0.000000e+00 : f32
    %295 = arith.select %293, %cst_102, %cst_103 : f32
    %296 = arith.sitofp %292 : i32 to f32
    %cst_104 = arith.constant 0.0303030312 : f32
    %297 = arith.mulf %296, %cst_104 : f32
    %cst_105 = arith.constant 0.000000e+00 : f32
    %298 = arith.addf %297, %cst_105 : f32
    %299 = vector.broadcast %3 : vector<32x1xf32> to vector<32x128xf32>
    %300 = vector.broadcast %281 : vector<1x128xf32> to vector<32x128xf32>
    %301 = arith.mulf %299, %300 : vector<32x128xf32>
    %302 = vector.broadcast %298 : f32 to vector<32x1xf32>
    %303 = arith.mulf %302, %4 : vector<32x1xf32>
    %304 = arith.addf %303, %5 : vector<32x1xf32>
    %305 = vector.broadcast %304 : vector<32x1xf32> to vector<32x128xf32>
    %306 = arith.addf %301, %305 : vector<32x128xf32>
    %307 = math.tanh %306 : vector<32x128xf32>
    %308 = vector.broadcast %6 : vector<32x1xf32> to vector<32x128xf32>
    %309 = arith.mulf %307, %308 : vector<32x128xf32>
    %cst_106 = arith.constant dense<0.000000e+00> : vector<128xf32>
    %310 = vector.multi_reduction <add>, %309, %cst_106 [0] : vector<32x128xf32> to vector<128xf32>
    %311 = vector.shape_cast %310 : vector<128xf32> to vector<1x128xf32>
    %312 = vector.broadcast %7 : vector<1x1xf32> to vector<1x128xf32>
    %313 = arith.addf %311, %312 : vector<1x128xf32>
    %314 = vector.broadcast %294 : f32 to vector<1x128xf32>
    %315 = arith.mulf %313, %314 : vector<1x128xf32>
    %316 = arith.addf %281, %315 : vector<1x128xf32>
    %317 = vector.extract_strided_slice %8 {offsets = [7, 0], sizes = [1, 128], strides = [1, 1]} : vector<8x128xf32> to vector<1x128xf32>
    %cst_107 = arith.constant 1.41421354 : f32
    %318 = arith.mulf %cst_107, %295 : f32
    %319 = vector.broadcast %318 : f32 to vector<1x128xf32>
    %320 = arith.mulf %317, %319 : vector<1x128xf32>
    %321 = arith.addf %316, %320 : vector<1x128xf32>
    %cst_108 = arith.constant 1.000000e-01 : f32
    %322 = vector.broadcast %cst_108 : f32 to vector<1x128xf32>
    %323 = arith.mulf %322, %321 : vector<1x128xf32>
    %324 = arith.addf %313, %323 : vector<1x128xf32>
    %cst_109 = arith.constant 0.707106769 : f32
    %325 = vector.broadcast %cst_109 : f32 to vector<1x128xf32>
    %326 = arith.mulf %324, %325 : vector<1x128xf32>
    %cst_110 = arith.constant 5.000000e-01 : f32
    %327 = arith.mulf %cst_110, %294 : f32
    %328 = arith.mulf %326, %326 : vector<1x128xf32>
    %329 = vector.broadcast %327 : f32 to vector<1x128xf32>
    %330 = arith.mulf %329, %328 : vector<1x128xf32>
    %331 = arith.addf %291, %330 : vector<1x128xf32>
    %332 = tpu.concatenate %41, %81, %121, %161, %201, %241, %281, %321 in 0 : vector<1x128xf32>, vector<1x128xf32>, vector<1x128xf32>, vector<1x128xf32>, vector<1x128xf32>, vector<1x128xf32>, vector<1x128xf32>, vector<1x128xf32> -> vector<8x128xf32>
    %c0_111 = arith.constant 0 : index
    %c0_112 = arith.constant 0 : index
    %333 = vector.load %arg9[%c0_111, %c0_112] : memref<8x128xf32, #tpu.memory_space<vmem>>, vector<8x128xf32>
    tpu.vector_store %arg9[%c0_111, %c0_112], %332 {strides = array<i32>} : memref<8x128xf32, #tpu.memory_space<vmem>>, vector<8x128xf32>,
    %c0_113 = arith.constant 0 : index
    %c0_114 = arith.constant 0 : index
    %334 = vector.load %arg11[%c0_113, %c0_114] : memref<1x128xf32, #tpu.memory_space<vmem>>, vector<1x128xf32>
    tpu.vector_store %arg11[%c0_113, %c0_114], %321 {strides = array<i32>} : memref<1x128xf32, #tpu.memory_space<vmem>>, vector<1x128xf32>,
    %c0_115 = arith.constant 0 : index
    %c0_116 = arith.constant 0 : index
    %335 = vector.load %arg10[%c0_115, %c0_116] : memref<1x128xf32, #tpu.memory_space<vmem>>, vector<1x128xf32>
    tpu.vector_store %arg10[%c0_115, %c0_116], %331 {strides = array<i32>} : memref<1x128xf32, #tpu.memory_space<vmem>>, vector<1x128xf32>,
    return
  }
  func.func @transform_0(%arg0: i32, %arg1: i32) -> (i32, i32) {
    %c0_i32 = arith.constant 0 : i32
    %c0_i32_0 = arith.constant 0 : i32
    return %c0_i32, %arg0 : i32, i32
  }
  func.func @transform_1(%arg0: i32, %arg1: i32) -> (i32, i32) {
    %c0_i32 = arith.constant 0 : i32
    return %arg1, %arg0 : i32, i32
  }
  func.func @transform_2(%arg0: i32, %arg1: i32) -> (i32, i32) {
    %c0_i32 = arith.constant 0 : i32
    %c0_i32_0 = arith.constant 0 : i32
    %c0_i32_1 = arith.constant 0 : i32
    return %c0_i32, %c0_i32_0 : i32, i32
  }
  func.func @transform_3(%arg0: i32, %arg1: i32) -> (i32, i32) {
    %c0_i32 = arith.constant 0 : i32
    %c0_i32_0 = arith.constant 0 : i32
    %c0_i32_1 = arith.constant 0 : i32
    return %c0_i32, %c0_i32_0 : i32, i32
  }
  func.func @transform_4(%arg0: i32, %arg1: i32) -> (i32, i32) {
    %c0_i32 = arith.constant 0 : i32
    %c0_i32_0 = arith.constant 0 : i32
    %c0_i32_1 = arith.constant 0 : i32
    return %c0_i32, %c0_i32_0 : i32, i32
  }
  func.func @transform_5(%arg0: i32, %arg1: i32) -> (i32, i32) {
    %c0_i32 = arith.constant 0 : i32
    %c0_i32_0 = arith.constant 0 : i32
    %c0_i32_1 = arith.constant 0 : i32
    return %c0_i32, %c0_i32_0 : i32, i32
  }
  func.func @transform_6(%arg0: i32, %arg1: i32) -> (i32, i32) {
    %c0_i32 = arith.constant 0 : i32
    %c0_i32_0 = arith.constant 0 : i32
    %c0_i32_1 = arith.constant 0 : i32
    return %c0_i32, %c0_i32_0 : i32, i32
  }
  func.func @transform_7(%arg0: i32, %arg1: i32) -> (i32, i32) {
    %c0_i32 = arith.constant 0 : i32
    return %arg1, %arg0 : i32, i32
  }
  func.func @transform_8(%arg0: i32, %arg1: i32) -> (i32, i32) {
    %c0_i32 = arith.constant 0 : i32
    %c0_i32_0 = arith.constant 0 : i32
    return %c0_i32, %arg0 : i32, i32
  }
}

</mosaic_0001>

<bundles_post_ra>
// kernel: sde_em_pallas.1
= control target key start
LH: loop header
LB: loop body
LE: loop exit
PB: predicated region body
PF: predicated region fallthrough
CT: control target
= control target key end

     0   :  { %s1534_s29 = smov 0   ;;  %s1536_s30 = smov 0   ;;  %s1966_s0 = inlined_call_operand.vmem [shape: f32[1,128], index: 0, kind: input, shape index: {}]   ;;  %s1967_s1 = inlined_call_operand.vmem [shape: f32[104,128], index: 1, kind: input, shape index: {}]   ;;  %s1968_s2 = inlined_call_operand.vmem [shape: f32[32,1], index: 2, kind: input, shape index: {}]   ;;  %s1969_s3 = inlined_call_operand.vmem [shape: f32[32,1], index: 3, kind: input, shape index: {}]   ;;  %s1970_s4 = inlined_call_operand.vmem [shape: f32[32,1], index: 4, kind: input, shape index: {}]   ;;  %s1971_s5 = inlined_call_operand.vmem [shape: f32[32,1], index: 5, kind: input, shape index: {}]   ;;  %s1972_s6 = inlined_call_operand.<no memory space> [shape: f32[1,1], index: 6, kind: input, shape index: {}]   ;;  %s1973_s7 = inlined_call_operand.vmem [shape: f32[104,128], index: 7, kind: output, shape index: {0}]   ;;  %s1974_s8 = inlined_call_operand.vmem [shape: f32[1,128], index: 8, kind: output, shape index: {1}]  }
   0x1   :  { %v14_v0 = vstv %s1972_s6  ;;  %s1538_s9 = smov 0  }
   0x2   :  { %15 = vst [vmem:[#allocation3] sm:$0x1] %v14_v0 }
   0x3 LB: > { %s30_s6 = sadd.s32 1, %s1477_s30  ;;  %p1358_p0 = scmp.ge.s32.totalorder %s1481_s9, 1  ;;  %s1481_s9 = sphi %s1538_s9, %s21_s9   ;;  %s1477_s30 = sphi %s1536_s30, %s1983_s30   ;;  %s1473_s29 = sphi %s1534_s29, %s1982_s29  }
   0x4   : > { %p31_p1 = scmp.ge.s32.totalorder %s30_s6, 13  ;;  %p293_p2 = scmp.lt.s32.totalorder %s1481_s9, 14 }
   0x6   : > { %s1985_s6 = smov (%p31_p1, %s30_s6), 0  ;;  %p294_p3 = pnand %p1358_p0, %p293_p2 }
   0x7   : > { %p340_p4 = scmp.lt.s32.totalorder (!%p294_p3), %s1473_s29, 12  ;;  %p1361_p5 = scmp.ne.s32.totalorder (!%p294_p3), %s1473_s29, 0 }
   0x8   : > { %297 = sbr.rel (%p294_p3) target bundleno = 547 (0x223), region = 48 }
   0xf   : > { %s341_s10 = scalar_select %p340_p4, %s1473_s29, 12 }
  0x10   : > { %360 = sbr.rel (%p1361_p5) target bundleno = 23 (0x17), region = 52  ;;  %v361_v1 = vld [vmem:[%s1966_s0] sm:$0x1] (!%p1361_p5)  ;;  %v1483_v2 = vmov (!%p1361_p5), 0.0  }
  0x11   : > { %s1359_s11 = sshll.u32 %s341_s10, 3  ;;  %362 = vst [vmem:[#allocation2] sm:$0x1] (!%p1361_p5), %v361_v1  ;;  %363 = vst [vmem:[%s1974_s8] sm:$0x1] (!%p1361_p5), %v1483_v2 }
  0x12   : > { %s1555_s14 = scalar_lea.vmem %s1967_s1, %s1359_s11  ;;  %s1560_s17 = scalar_lea.vmem %s1973_s7, %s1359_s11 }
  0x17 PF: > { %v366_v3 = vld [vmem:[%s1968_s2 + $0x10] sm:$0xff]  ;;  %v364_v4 = vld [vmem:[%s1968_s2] sm:$0xff]  ;;  %s1574_s26 = sshll.u32 %s1473_s29, 3  ;;  %v1484_v5 = vmov 0   ;;  %v367_v6 = vld [vmem:[%s1968_s2 + $0x18] sm:$0xff]  ;;  %vm1227_vm0 = vcmask 1040384  }
  0x18   : > { %1394 = vset.pattern.permute.xlu1 %v1484_v5  ;;  %1393 = vset.pattern.permute.xlu0 %v1484_v5  ;;  %s388_s27 = scvt.s32.f32 %s1574_s26  ;;  %v365_v7 = vld [vmem:[%s1968_s2 + $0x8] sm:$0xff]  ;;  %v1586_v8 = vld [vmem:[%s1969_s3] sm:$0xff]  ;;  %v1596_v10 = vld [vmem:[%s1969_s3 + $0x18] sm:$0xff]  ;;  %s516_s23 = sadd.s32 1, %s1574_s26  ;;  %vm1229_vm1 = vcmask 1041408   ;;  %vm1231_vm2 = vcmask 1042432  }
  0x19   : > { %403 = vperm.xlu1 %1394, %v366_v3   ;;  %393 = vperm.xlu0 %1393, %v364_v4   ;;  %v1591_v9 = vld [vmem:[%s1969_s3 + $0x8] sm:$0xff]  ;;  %v1601_v11 = vld [vmem:[%s1969_s3 + $0x10] sm:$0xff]  ;;  %v1607_v12 = vld [vmem:[%s1970_s4] sm:$0xff]  ;;  %s616_s10 = sadd.s32 2, %s1574_s26  ;;  %s520_s16 = scvt.s32.f32 %s516_s23  ;;  %vm1233_vm3 = vcmask 1043456   ;;  %vm1235_vm4 = vcmask 1044480  }
  0x1a   : > { %s389_s15 = smul.f32 0.030303031, %s388_s27  ;;  %v1612_v14 = vld [vmem:[%s1970_s4 + $0x8] sm:$0xff]  ;;  %p1618_p6 = scmp.lt.s32.totalorder %s616_s10, 99  ;;  %v1625_v18 = vld [vmem:[%s1970_s4 + $0x18] sm:$0xff]  ;;  %v1630_v19 = vld [vmem:[%s1970_s4 + $0x10] sm:$0xff] }
  0x1b   : > { %s716_s18 = sadd.s32 3, %s1574_s26  ;;  %s521_s20 = smul.f32 0.030303031, %s520_s16  ;;  %v1649_v25 = vld [vmem:[%s1555_s14] sm:$0xff]  ;;  %v377_v27 = vld [vmem:[%s1971_s5 + $0x8] sm:$0xff]  ;;  %v379_v32 = vld [vmem:[%s1971_s5 + $0x18] sm:$0xff] }
  0x1c   : > { %v421_v13 = vstv %s389_s15  ;;  %s619_s19 = scalar_select %p1618_p6, 0.17407766, 0.0  ;;  %v376_v28 = vld [vmem:[%s1971_s5] sm:$0xff]  ;;  %v378_v33 = vld [vmem:[%s1971_s5 + $0x10] sm:$0xff]  ;;  %vm1237_vm5 = vcmask 1045504  }
  0x1d   : > { %408 = vperm.xlu1 %1394, %v367_v6   ;;  %398 = vperm.xlu0 %1393, %v365_v7   ;;  %v422_v15 = vmul.f32 %v421_v13, %v1586_v8  ;;  %v423_v16 = vmul.f32 %v421_v13, %v1591_v9  ;;  %v425_v17 = vmul.f32 %v421_v13, %v1596_v10  ;;  %p1644_p7 = scmp.lt.s32.totalorder %s716_s18, 99  ;;  %s1651_s24 = scvt.s32.f32 %s616_s10  ;;  %v533_v29 = vstv %s521_s20  ;;  %v380_v39 = vld [vmem:[#allocation3] sm:$0x1] }
  0x1e   : > { %v424_v20 = vmul.f32 %v421_v13, %v1601_v11  ;;  %s687_s22 = smul.f32 1.4142135, %s619_s19  ;;  %s817_s25 = sadd.s32 4, %s1574_s26  ;;  %v534_v31 = vmul.f32 %v533_v29, %v1586_v8  ;;  %v536_v37 = vmul.f32 %v533_v29, %v1601_v11  ;;  %v535_v38 = vmul.f32 %v533_v29, %v1591_v9 }
  0x1f   : > { %v426_v21 = vadd.f32 %v422_v15, %v1607_v12  ;;  %v427_v22 = vadd.f32 %v423_v16, %v1612_v14  ;;  %v429_v23 = vadd.f32 %v425_v17, %v1625_v18  ;;  %s719_s14 = scalar_select %p1644_p7, 0.17407766, 0.0  ;;  %v537_v42 = vmul.f32 %v533_v29, %v1596_v10 }
  0x20   : > { %v428_v24 = vadd.f32 %v424_v20, %v1630_v19  ;;  %v688_v26 = vstv %s687_s22  ;;  %p1667_p8 = scmp.lt.s32.totalorder %s817_s25, 99  ;;  %s621_s22 = smul.f32 0.030303031, %s1651_s24  ;;  %v538_v36 = vadd.f32 %v534_v31, %v1607_v12  ;;  %v540_v44 = vadd.f32 %v536_v37, %v1630_v19 }
  0x21   : > { %432 = vperm.xlu1 %1394, %v426_v21   ;;  %437 = vperm.xlu0 %1393, %v427_v22   ;;  %v1661_v30 = vmul.f32 %v688_v26, %v1649_v25  ;;  %s787_s29 = smul.f32 1.4142135, %s719_s14  ;;  %s917_s27 = sadd.s32 5, %s1574_s26  ;;  %v539_v45 = vadd.f32 %v535_v38, %v1612_v14  ;;  %v541_v47 = vadd.f32 %v537_v42, %v1625_v18  ;;  %vm1239_vm6 = vcmask 1046528  }
  0x22   : > { %s820_s28 = scalar_select %p1667_p8, 0.17407766, 0.0  ;;  %v633_v40 = vstv %s621_s22 }
  0x23   : > { %v788_v34 = vstv %s787_s29  ;;  %p1687_p9 = scmp.lt.s32.totalorder %s917_s27, 99  ;;  %s720_s24 = scvt.s32.f32 %s716_s18  ;;  %v634_v46 = vmul.f32 %v633_v40, %v1586_v8  ;;  %v636_v48 = vmul.f32 %v633_v40, %v1601_v11  ;;  %v635_v51 = vmul.f32 %v633_v40, %v1591_v9 }
  0x24   : > { %v1681_v35 = vmul.f32 %v788_v34, %v1649_v25  ;;  %s888_s13 = smul.f32 1.4142135, %s820_s28  ;;  %s1018_s14 = sadd.s32 6, %s1574_s26  ;;  %v637_v54 = vmul.f32 %v633_v40, %v1596_v10 }
  0x25   : > { %447 = vperm.xlu1 %1394, %v429_v23   ;;  %442 = vperm.xlu0 %1393, %v428_v24   ;;  %s920_s29 = scalar_select %p1687_p9, 0.17407766, 0.0  ;;  %v638_v50 = vadd.f32 %v634_v46, %v1607_v12  ;;  %v640_v55 = vadd.f32 %v636_v48, %v1630_v19  ;;  %v639_v56 = vadd.f32 %v635_v51, %v1612_v14 }
  0x26   : > { %v889_v41 = vstv %s888_s13  ;;  %s721_s18 = smul.f32 0.030303031, %s720_s24  ;;  %p1708_p10 = scmp.lt.s32.totalorder %s1018_s14, 99  ;;  %v641_v63 = vadd.f32 %v637_v54, %v1625_v18 }
  0x27   : > { %v1699_v43 = vmul.f32 %v889_v41, %v1649_v25  ;;  %s988_s16 = smul.f32 1.4142135, %s920_s29  ;;  %s1716_s19 = scvt.s32.f32 %s817_s25 }
  0x28   : > { %s1119_s20 = sadd.s32 7, %s1574_s26  ;;  %v733_v53 = vstv %s721_s18  ;;  %p385_p12 = scmp.lt.s32.totalorder %s1574_s26, 99 }
  0x29   : > { %465 = vperm.xlu1 %1394, %v377_v27   ;;  %460 = vperm.xlu0 %1393, %v376_v28   ;;  %v989_v49 = vstv %s988_s16  ;;  %s1021_s22 = scalar_select %p1708_p10, 0.17407766, 0.0  ;;  %v734_v57 = vmul.f32 %v733_v53, %v1586_v8  ;;  %v736_v60 = vmul.f32 %v733_v53, %v1601_v11  ;;  %v735_v61 = vmul.f32 %v733_v53, %v1591_v9 }
  0x2a   : > { %v1722_v52 = vmul.f32 %v989_v49, %v1649_v25  ;;  %p1726_p11 = scmp.lt.s32.totalorder %s1119_s20, 99  ;;  %s1123_s24 = scvt.s32.f32 %s1119_s20  ;;  %v737_v5 = vmul.f32 %v733_v53, %v1596_v10 }
  0x2b   : > { %s1089_s25 = smul.f32 1.4142135, %s1021_s22  ;;  %v738_v62 = vadd.f32 %v734_v57, %v1607_v12  ;;  %v740_v15 = vadd.f32 %v736_v60, %v1630_v19  ;;  %v739_v16 = vadd.f32 %v735_v61, %v1612_v14  ;;  %s1022_s20 = scvt.s32.f32 %s1018_s14 }
  0x2c   : > { %s822_s13 = smul.f32 0.030303031, %s1716_s19  ;;  %s921_s19 = scvt.s32.f32 %s917_s27  ;;  %v741_v24 = vadd.f32 %v737_v5, %v1625_v18 }
  0x2d   : > { %475 = vperm.xlu1 %1394, %v379_v32   ;;  %470 = vperm.xlu0 %1393, %v378_v33   ;;  %v1090_v58 = vstv %s1089_s25  ;;  %s1122_s29 = scalar_select %p1726_p11, 0.17407766, 0.0 }
  0x2e   : > { %v1736_v59 = vmul.f32 %v1090_v58, %v1649_v25  ;;  %s1124_s18 = smul.f32 0.030303031, %s1123_s24  ;;  %v834_v1 = vstv %s822_s13  ;;  %p1834_p13 = scmp.lt.s32.totalorder %s516_s23, 99 }
  0x2f   : > { %s1190_s16 = smul.f32 1.4142135, %s1122_s29  ;;  %v835_v21 = vmul.f32 %v834_v1, %v1586_v8  ;;  %v837_v27 = vmul.f32 %v834_v1, %v1601_v11  ;;  %v836_v28 = vmul.f32 %v834_v1, %v1591_v9  ;;  %v838_v31 = vmul.f32 %v834_v1, %v1596_v10 }
  0x30   : > { %v1136_v0 = vstv %s1124_s18  ;;  %s922_s27 = smul.f32 0.030303031, %s921_s19 }
  0x31   : > { %544 = vperm.xlu1 %1394, %v538_v36   ;;  %493 = vperm.xlu0 %1393, %v380_v39   ;;  %v1137_v2 = vmul.f32 %v1136_v0, %v1586_v8  ;;  %v1191_v3 = vstv %s1190_s16  ;;  %v1139_v4 = vmul.f32 %v1136_v0, %v1601_v11  ;;  %v1138_v7 = vmul.f32 %v1136_v0, %v1591_v9  ;;  %s1023_s22 = smul.f32 0.030303031, %s1022_s20 }
  0x32   : > { %v1750_v6 = vmul.f32 %v1191_v3, %v1649_v25  ;;  %v1140_v13 = vmul.f32 %v1136_v0, %v1596_v10  ;;  %v839_v26 = vadd.f32 %v835_v21, %v1607_v12  ;;  %v934_v29 = vstv %s922_s27  ;;  %s387_s14 = scalar_select %p385_p12, 0.17407766, 0.0 }
  0x33   : > { %v1141_v17 = vadd.f32 %v1137_v2, %v1607_v12  ;;  %v1143_v20 = vadd.f32 %v1139_v4, %v1630_v19  ;;  %v1142_v22 = vadd.f32 %v1138_v7, %v1612_v14  ;;  %v841_v32 = vadd.f32 %v837_v27, %v1630_v19  ;;  %s386_s25 = scalar_select %p385_p12, 0.030303031, 0.0 }
  0x34   : > { %v1144_v23 = vadd.f32 %v1140_v13, %v1625_v18  ;;  %v840_v33 = vadd.f32 %v836_v28, %v1612_v14  ;;  %v935_v34 = vmul.f32 %v934_v29, %v1586_v8  ;;  %v842_v36 = vadd.f32 %v838_v31, %v1625_v18  ;;  %s504_s24 = smul.f32 1.4142135, %s387_s14 }
  0x35   : > { %554 = vperm.xlu1 %1394, %v540_v44   ;;  %549 = vperm.xlu0 %1393, %v539_v45   ;;  %v937_v38 = vmul.f32 %v934_v29, %v1601_v11  ;;  %v936_v39 = vmul.f32 %v934_v29, %v1591_v9  ;;  %v1035_v40 = vstv %s1023_s22  ;;  %v938_v41 = vmul.f32 %v934_v29, %v1596_v10  ;;  %s511_s13 = smul.f32 0.5, %s386_s25 }
  0x36   : > { %v939_v37 = vadd.f32 %v935_v34, %v1607_v12  ;;  %v1036_v45 = vmul.f32 %v1035_v40, %v1586_v8  ;;  %v1038_v48 = vmul.f32 %v1035_v40, %v1601_v11  ;;  %v1037_v49 = vmul.f32 %v1035_v40, %v1591_v9  ;;  %s519_s18 = scalar_select %p1834_p13, 0.17407766, 0.0 }
  0x37   : > { %v941_v42 = vadd.f32 %v937_v38, %v1630_v19  ;;  %v940_v44 = vadd.f32 %v936_v39, %v1612_v14  ;;  %v942_v46 = vadd.f32 %v938_v41, %v1625_v18  ;;  %v1039_v53 = vmul.f32 %v1035_v40, %v1596_v10  ;;  %v382_v10 = vld [vmem:[#allocation2] sm:$0x1]  ;;  %s518_s23 = scalar_select %p1834_p13, 0.030303031, 0.0 }
  0x38   : > { %v1041_v51 = vadd.f32 %v1037_v49, %v1612_v14  ;;  %v412_v11 = vlaneseq  ;;  %v501_v40 = vstv %s386_s25  ;;  %v505_v41 = vstv %s504_s24  ;;  %s587_s26 = smul.f32 1.4142135, %s519_s18 }
  0x39   : > { %644 = vperm.xlu1 %1394, %v638_v50   ;;  %559 = vperm.xlu0 %1393, %v541_v47   ;;  %v1040_v47 = vadd.f32 %v1036_v45, %v1607_v12  ;;  %v1042_v50 = vadd.f32 %v1038_v48, %v1630_v19  ;;  %v1043_v8 = vadd.f32 %v1039_v53, %v1625_v18  ;;  %s611_s16 = smul.f32 0.5, %s518_s23 }
  0x3a   : > { %v1787_v12 = vshrl.u32 %v412_v11, 7  ;;  %s618_s20 = scalar_select %p1618_p6, 0.030303031, 0.0 }
  0x3b   : > { %s718_s11 = scalar_select %p1644_p7, 0.030303031, 0.0 }
  0x3c   : > { %v1790_v9 = vsub.s32 0, %v1787_v12  ;;  %s711_s22 = smul.f32 0.5, %s618_s20 }
  0x3d   : > { %654 = vperm.xlu1 %1394, %v640_v55   ;;  %649 = vperm.xlu0 %1393, %v639_v56   ;;  %s812_s14 = smul.f32 0.5, %s718_s11 }
  0x3e   : > { %v415_v54 = vrot.slane %v382_v10, %v1790_v9  ;;  %s819_s21 = scalar_select %p1667_p8, 0.030303031, 0.0 }
  0x3f   : > { %s919_s25 = scalar_select %p1687_p9, 0.030303031, 0.0 }
  0x40   : > { %s912_s10 = smul.f32 0.5, %s819_s21 }
  0x41   : > { %744 = vperm.xlu1 %1394, %v738_v62   ;;  %659 = vperm.xlu0 %1393, %v641_v63   ;;  %s1013_s24 = smul.f32 0.5, %s919_s25 }
  0x42   : > { %s1020_s12 = scalar_select %p1708_p10, 0.030303031, 0.0 }
  0x43   : > { %s1121_s15 = scalar_select %p1726_p11, 0.030303031, 0.0 }
  0x45   : > { %754 = vperm.xlu1 %1394, %v740_v15   ;;  %749 = vperm.xlu0 %1393, %v739_v16   ;;  %s1216_s29 = smul.f32 0.5, %s1121_s15 }
  0x49   : > { %845 = vperm.xlu1 %1394, %v839_v26   ;;  %759 = vperm.xlu0 %1393, %v741_v24  }
  0x4d   : > { %855 = vperm.xlu1 %1394, %v841_v32   ;;  %850 = vperm.xlu0 %1393, %v840_v33  }
  0x51   : > { %945 = vperm.xlu1 %1394, %v939_v37   ;;  %860 = vperm.xlu0 %1393, %v842_v36  }
  0x55   : > { %955 = vperm.xlu1 %1394, %v941_v42   ;;  %950 = vperm.xlu0 %1393, %v940_v44   ;;  %v506_v44 = vmul.f32 %v505_v41, %v1649_v25 }
  0x59   : > { %1046 = vperm.xlu1 %1394, %v1040_v47   ;;  %960 = vperm.xlu0 %1393, %v942_v46  }
  0x5d   : > { %1056 = vperm.xlu1 %1394, %v1042_v50   ;;  %1051 = vperm.xlu0 %1393, %v1041_v51  }
  0x61   : > { %1147 = vperm.xlu1 %1394, %v1141_v17   ;;  %1061 = vperm.xlu0 %1393, %v1043_v8  }
  0x65   : > { %1157 = vperm.xlu1 %1394, %v1143_v20   ;;  %1152 = vperm.xlu0 %1393, %v1142_v22  }
  0x69   : > { %1162 = vperm.xlu0 %1393, %v1144_v23  }
  0x98   : > { %v1792_v19 = vpop.permute.xlu1 %403  ;;  %v1794_v14 = vpop.permute.xlu0 %393 }
  0x99   : > { %v417_v56 = vmul.f32 %v415_v54, %v1794_v14  ;;  %v419_v0 = vmul.f32 %v415_v54, %v1792_v19 }
  0x9c   : > { %v1797_v55 = vpop.permute.xlu1 %408  ;;  %v1799_v18 = vpop.permute.xlu0 %398 }
  0x9d   : > { %v418_v57 = vmul.f32 %v415_v54, %v1799_v18  ;;  %v420_v63 = vmul.f32 %v415_v54, %v1797_v55 }
  0xa0   : > { %v433_v58 = vpop.permute.xlu1 %432  ;;  %v438_v60 = vpop.permute.xlu0 %437 }
  0xa1   : > { %v450_v61 = vadd.f32 %v433_v58, %v417_v56  ;;  %v451_v62 = vadd.f32 %v438_v60, %v418_v57 }
  0xa3   : > { %1395 = vtanh.f32 %v450_v61 }
  0xa4   : > { %1397 = vtanh.f32 %v451_v62  ;;  %v448_v1 = vpop.permute.xlu1 %447  ;;  %v443_v2 = vpop.permute.xlu0 %442  ;;  %v513_v62 = vstv %s511_s13  ;;  %s1114_s13 = smul.f32 0.5, %s1020_s12 }
  0xa5   : > { %v453_v3 = vadd.f32 %v448_v1, %v420_v63  ;;  %v452_v4 = vadd.f32 %v443_v2, %v419_v0 }
  0xa7   : > { %1399 = vtanh.f32 %v453_v3 }
  0xa8   : > { %1401 = vtanh.f32 %v452_v4  ;;  %v1805_v5 = vpop.permute.xlu0 %460  ;;  %v1807_v15 = vpop.permute.xlu1 %465 }
  0xac   : > { %v1811_v22 = vpop.permute.xlu0 %470  ;;  %v1814_v26 = vpop.permute.xlu1 %475 }
  0xad   : > { %v1396_v7 = vpop.eup %1395 }
  0xae   : > { %v1398_v13 = vpop.eup %1397  ;;  %v478_v17 = vmul.f32 %v1396_v7, %v1805_v5 }
  0xaf   : > { %v479_v16 = vmul.f32 %v1398_v13, %v1807_v15 }
  0xb0   : > { %v494_v36 = vpop.permute.xlu0 %493  ;;  %v545_v47 = vpop.permute.xlu1 %544 }
  0xb1   : > { %v1400_v20 = vpop.eup %1399  ;;  %v482_v23 = vadd.f32 %v479_v16, %v478_v17  ;;  %v1819_v39 = vrot.slane %v494_v36, %v1790_v9 }
  0xb2   : > { %v1402_v21 = vpop.eup %1401  ;;  %v481_v27 = vmul.f32 %v1400_v20, %v1814_v26  ;;  %v1485_v20 = vmov 1966171168  }
  0xb3   : > { %v480_v24 = vmul.f32 %v1402_v21, %v1811_v22  ;;  %v592_v21 = vunpack.c.l.s4 %v1485_v20 }
  0xb4   : > { %v550_v49 = vpop.permute.xlu0 %549  ;;  %v555_v56 = vpop.permute.xlu1 %554 }
  0xb5   : > { %v483_v28 = vadd.f32 %v482_v23, %v480_v24 }
  0xb7   : > { %v484_v29 = vadd.f32 %v483_v28, %v481_v27 }
  0xb8   : > { %v560_v63 = vpop.permute.xlu0 %559 }
  0xb9   : > { %v485_v31 = vrot.slane %v484_v29, 4 }
  0xbb   : > { %v486_v32 = vadd.f32 %v485_v31, %v484_v29  ;;  %v593_v29 = vunpack.c.0.s8 %v592_v21 }
  0xbd   : > { %v487_v33 = vrot.slane %v486_v32, 2  ;;  %v1846_v36 = vsub.s32 %v593_v29, %v1787_v12  ;;  %v645_v12 = vpop.permute.xlu1 %644 }
  0xbf   : > { %v488_v34 = vadd.f32 %v487_v33, %v486_v32  ;;  %v588_v32 = vstv %s587_s26 }
  0xc1   : > { %v489_v37 = vrot.slane %v488_v34, 1 }
  0xc3   : > { %v490_v38 = vadd.f32 %v489_v37, %v488_v34  ;;  %v589_v34 = vmul.f32 %v588_v32, %v1649_v25 }
  0xc5   : > { %v500_v42 = vadd.f32 %v1819_v39, %v490_v38 }
  0xc7   : > { %v502_v45 = vmul.f32 %v501_v40, %v500_v42  ;;  %v597_v40 = vrot.slane %v589_v34, %v1846_v36 }
  0xc9   : > { %v503_v46 = vadd.f32 %v502_v45, %v382_v10 }
  0xcb   : > { %v1823_v48 = vadd.f32 %v506_v44, %v503_v46  ;;  %v598_v44 = vcombine.high %v597_v40, %v597_v40  ;;  %v584_v46 = vstv %s518_s23 }
  0xcd   : > { %v508_v50 = vmul.f32 0.1, %v1823_v48  ;;  %v527_v51 = vrot.slane %v1823_v48, %v1790_v9 }
  0xcf   : > { %v509_v53 = vadd.f32 %v508_v50, %v500_v42  ;;  %v531_v8 = vmul.f32 %v527_v51, %v1792_v19  ;;  %v529_v11 = vmul.f32 %v527_v51, %v1794_v14  ;;  %v530_v54 = vmul.f32 %v527_v51, %v1799_v18 }
  0xd0   : > { %v532_v10 = vmul.f32 %v527_v51, %v1797_v55 }
  0xd1   : > { %v510_v57 = vmul.f32 0.70710677, %v509_v53  ;;  %v564_v58 = vadd.f32 %v555_v56, %v531_v8  ;;  %v562_v60 = vadd.f32 %v545_v47, %v529_v11  ;;  %v563_v61 = vadd.f32 %v550_v49, %v530_v54  ;;  %v650_v53 = vpop.permute.xlu0 %649 }
  0xd2   : > { %v565_v1 = vadd.f32 %v560_v63, %v532_v10  ;;  %v605_v49 = vrot.slane %v598_v44, %v1846_v36 }
  0xd3   : > { %1403 = vtanh.f32 %v564_v58  ;;  %v512_v0 = vmul.f32 %v510_v57, %v510_v57  ;;  %v655_v58 = vpop.permute.xlu1 %654 }
  0xd4   : > { %1405 = vtanh.f32 %v562_v60 }
  0xd5   : > { %1407 = vtanh.f32 %v563_v61  ;;  %v514_v2 = vmul.f32 %v513_v62, %v512_v0 }
  0xd6   : > { %1409 = vtanh.f32 %v565_v1 }
  0xdd   : > { %v1404_v3 = vpop.eup %1403 }
  0xde   : > { %v1406_v4 = vpop.eup %1405  ;;  %v572_v23 = vmul.f32 %v1404_v3, %v1811_v22  ;;  %v613_v3 = vstv %s611_s16 }
  0xdf   : > { %v1408_v7 = vpop.eup %1407  ;;  %v570_v13 = vmul.f32 %v1406_v4, %v1805_v5  ;;  %v383_v4 = vld [vmem:[%s1974_s8] sm:$0x1] }
  0xe0   : > { %v571_v16 = vmul.f32 %v1408_v7, %v1807_v15  ;;  %v1410_v17 = vpop.eup %1409  ;;  %v660_v7 = vpop.permute.xlu0 %659 }
  0xe1   : > { %v573_v28 = vmul.f32 %v1410_v17, %v1814_v26  ;;  %v515_v17 = vadd.f32 %v514_v2, %v383_v4  ;;  %v713_v4 = vstv %s711_s22 }
  0xe2   : > { %v574_v24 = vadd.f32 %v571_v16, %v570_v13 }
  0xe4   : > { %v575_v27 = vadd.f32 %v574_v24, %v572_v23 }
  0xe6   : > { %v576_v31 = vadd.f32 %v575_v27, %v573_v28 }
  0xe8   : > { %v577_v33 = vrot.slane %v576_v31, 4 }
  0xea   : > { %v578_v37 = vadd.f32 %v577_v33, %v576_v31 }
  0xec   : > { %v579_v38 = vrot.slane %v578_v37, 2 }
  0xee   : > { %v580_v41 = vadd.f32 %v579_v38, %v578_v37 }
  0xf0   : > { %v581_v42 = vrot.slane %v580_v41, 1 }
  0xf2   : > { %v582_v45 = vadd.f32 %v581_v42, %v580_v41  ;;  %v697_v41 = vrot.slane %v1661_v30, %v1846_v36 }
  0xf4   : > { %v583_v47 = vadd.f32 %v582_v45, %v1819_v39  ;;  %v704_v45 = vrot.slane %v697_v41, %v1846_v36 }
  0xf6   : > { %v585_v50 = vmul.f32 %v584_v46, %v583_v47 }
  0xf8   : > { %v586_v25 = vadd.f32 %v585_v50, %v1823_v48  ;;  %v705_v50 = vcombine.high %v704_v45, %v704_v45 }
  0xfa   : > { %v607_v51 = vadd.f32 %v605_v49, %v586_v25 }
  0xfc   : > { %v608_v8 = vmul.f32 0.1, %v607_v51  ;;  %v627_v11 = vrot.slane %v607_v51, %v1790_v9 }
  0xfe   : > { %v609_v54 = vadd.f32 %v608_v8, %v583_v47  ;;  %v631_v56 = vmul.f32 %v627_v11, %v1792_v19  ;;  %v629_v10 = vmul.f32 %v627_v11, %v1794_v14  ;;  %v630_v57 = vmul.f32 %v627_v11, %v1799_v18 }
  0xff   : > { %v632_v60 = vmul.f32 %v627_v11, %v1797_v55  ;;  %v1228_v61 = vsel %vm1227_vm0, %v1823_v48, %v627_v11  ;;  %v684_v47 = vstv %s618_s20  ;;  %v750_v11 = vpop.permute.xlu0 %749 }
 0x100   : > { %v610_v62 = vmul.f32 0.70710677, %v609_v54  ;;  %v664_v63 = vadd.f32 %v655_v58, %v631_v56  ;;  %v662_v0 = vadd.f32 %v645_v12, %v629_v10  ;;  %v663_v1 = vadd.f32 %v650_v53, %v630_v57  ;;  %v745_v53 = vpop.permute.xlu1 %744 }
 0x101   : > { %v665_v16 = vadd.f32 %v660_v7, %v632_v60 }
 0x102   : > { %v612_v13 = vmul.f32 %v610_v62, %v610_v62  ;;  %1411 = vtanh.f32 %v664_v63 }
 0x103   : > { %1413 = vtanh.f32 %v662_v0  ;;  %v760_v7 = vpop.permute.xlu0 %759 }
 0x104   : > { %v614_v20 = vmul.f32 %v613_v3, %v612_v13  ;;  %1415 = vtanh.f32 %v663_v1  ;;  %v755_v60 = vpop.permute.xlu1 %754 }
 0x105   : > { %1417 = vtanh.f32 %v665_v16 }
 0x106   : > { %v615_v21 = vadd.f32 %v614_v20, %v515_v17 }
 0x10c   : > { %v1412_v48 = vpop.eup %1411 }
 0x10d   : > { %v1414_v23 = vpop.eup %1413  ;;  %v672_v31 = vmul.f32 %v1412_v48, %v1811_v22 }
 0x10e   : > { %v1416_v24 = vpop.eup %1415  ;;  %v670_v27 = vmul.f32 %v1414_v23, %v1805_v5 }
 0x10f   : > { %v671_v28 = vmul.f32 %v1416_v24, %v1807_v15  ;;  %v1418_v29 = vpop.eup %1417 }
 0x110   : > { %v673_v34 = vmul.f32 %v1418_v29, %v1814_v26 }
 0x111   : > { %v674_v32 = vadd.f32 %v671_v28, %v670_v27 }
 0x113   : > { %v675_v33 = vadd.f32 %v674_v32, %v672_v31 }
 0x115   : > { %v676_v2 = vadd.f32 %v675_v33, %v673_v34 }
 0x117   : > { %v677_v37 = vrot.slane %v676_v2, 4 }
 0x119   : > { %v678_v38 = vadd.f32 %v677_v37, %v676_v2 }
 0x11b   : > { %v679_v40 = vrot.slane %v678_v38, 2 }
 0x11d   : > { %v680_v42 = vadd.f32 %v679_v40, %v678_v38 }
 0x11f   : > { %v681_v44 = vrot.slane %v680_v42, 1 }
 0x121   : > { %v682_v46 = vadd.f32 %v681_v44, %v680_v42 }
 0x123   : > { %v683_v49 = vadd.f32 %v682_v46, %v1819_v39  ;;  %v784_v46 = vstv %s718_s11 }
 0x125   : > { %v685_v25 = vmul.f32 %v684_v47, %v683_v49 }
 0x127   : > { %v686_v12 = vadd.f32 %v685_v25, %v607_v51 }
 0x129   : > { %v707_v8 = vadd.f32 %v705_v50, %v686_v12  ;;  %v846_v12 = vpop.permute.xlu1 %845 }
 0x12b   : > { %v708_v54 = vmul.f32 0.1, %v707_v8  ;;  %v727_v56 = vrot.slane %v707_v8, %v1790_v9 }
 0x12d   : > { %v709_v30 = vadd.f32 %v708_v54, %v683_v49  ;;  %v731_v10 = vmul.f32 %v727_v56, %v1792_v19  ;;  %v729_v57 = vmul.f32 %v727_v56, %v1794_v14  ;;  %v730_v58 = vmul.f32 %v727_v56, %v1799_v18 }
 0x12e   : > { %v732_v62 = vmul.f32 %v727_v56, %v1797_v55  ;;  %v1230_v63 = vsel %vm1229_vm1, %v1228_v61, %v727_v56 }
 0x12f   : > { %v710_v51 = vmul.f32 0.70710677, %v709_v30  ;;  %v764_v0 = vadd.f32 %v755_v60, %v731_v10  ;;  %v762_v1 = vadd.f32 %v745_v53, %v729_v57  ;;  %v763_v3 = vadd.f32 %v750_v11, %v730_v58  ;;  %v856_v58 = vpop.permute.xlu1 %855 }
 0x130   : > { %v765_v16 = vadd.f32 %v760_v7, %v732_v62 }
 0x131   : > { %v712_v13 = vmul.f32 %v710_v51, %v710_v51  ;;  %1419 = vtanh.f32 %v764_v0 }
 0x132   : > { %1421 = vtanh.f32 %v762_v1  ;;  %v814_v1 = vstv %s812_s14 }
 0x133   : > { %v714_v17 = vmul.f32 %v713_v4, %v712_v13  ;;  %1423 = vtanh.f32 %v763_v3 }
 0x134   : > { %1425 = vtanh.f32 %v765_v16 }
 0x135   : > { %v715_v20 = vadd.f32 %v714_v17, %v615_v21  ;;  %v797_v21 = vrot.slane %v1681_v35, %v1846_v36  ;;  %v851_v35 = vpop.permute.xlu0 %850 }
 0x137   : > { %v798_v40 = vcombine.high %v797_v21, %v797_v21  ;;  %v892_v21 = vcombine.high %v1699_v43, %v1699_v43 }
 0x139   : > { %v805_v44 = vrot.slane %v798_v40, %v1846_v36  ;;  %v861_v4 = vpop.permute.xlu0 %860  ;;  %v899_v40 = vrot.slane %v892_v21, %v1846_v36 }
 0x13b   : > { %v1420_v48 = vpop.eup %1419  ;;  %v806_v49 = vcombine.high %v805_v44, %v805_v44 }
 0x13c   : > { %v1422_v23 = vpop.eup %1421  ;;  %v772_v29 = vmul.f32 %v1420_v48, %v1811_v22 }
 0x13d   : > { %v1424_v24 = vpop.eup %1423  ;;  %v770_v61 = vmul.f32 %v1422_v23, %v1805_v5 }
 0x13e   : > { %v771_v27 = vmul.f32 %v1424_v24, %v1807_v15  ;;  %v1426_v28 = vpop.eup %1425 }
 0x13f   : > { %v773_v33 = vmul.f32 %v1426_v28, %v1814_v26 }
 0x140   : > { %v774_v31 = vadd.f32 %v771_v27, %v770_v61 }
 0x142   : > { %v775_v32 = vadd.f32 %v774_v31, %v772_v29 }
 0x144   : > { %v776_v34 = vadd.f32 %v775_v32, %v773_v33 }
 0x146   : > { %v777_v2 = vrot.slane %v776_v34, 4 }
 0x148   : > { %v778_v37 = vadd.f32 %v777_v2, %v776_v34 }
 0x14a   : > { %v779_v38 = vrot.slane %v778_v37, 2 }
 0x14c   : > { %v780_v41 = vadd.f32 %v779_v38, %v778_v37 }
 0x14e   : > { %v781_v42 = vrot.slane %v780_v41, 1 }
 0x150   : > { %v782_v45 = vadd.f32 %v781_v42, %v780_v41  ;;  %v885_v42 = vstv %s819_s21 }
 0x152   : > { %v783_v47 = vadd.f32 %v782_v45, %v1819_v39  ;;  %v906_v45 = vrot.slane %v899_v40, %v1846_v36 }
 0x154   : > { %v785_v50 = vmul.f32 %v784_v46, %v783_v47 }
 0x156   : > { %v786_v25 = vadd.f32 %v785_v50, %v707_v8 }
 0x158   : > { %v808_v53 = vadd.f32 %v806_v49, %v786_v25  ;;  %v946_v49 = vpop.permute.xlu1 %945  ;;  %v951_v25 = vpop.permute.xlu0 %950 }
 0x15a   : > { %v809_v11 = vmul.f32 0.1, %v808_v53  ;;  %v828_v54 = vrot.slane %v808_v53, %v1790_v9 }
 0x15c   : > { %v810_v56 = vadd.f32 %v809_v11, %v783_v47  ;;  %v830_v30 = vmul.f32 %v828_v54, %v1794_v14  ;;  %v832_v10 = vmul.f32 %v828_v54, %v1792_v19  ;;  %v1232_v57 = vsel %vm1231_vm2, %v1230_v63, %v828_v54 }
 0x15d   : > { %v831_v60 = vmul.f32 %v828_v54, %v1799_v18  ;;  %v833_v62 = vmul.f32 %v828_v54, %v1797_v55 }
 0x15e   : > { %v811_v8 = vmul.f32 0.70710677, %v810_v56  ;;  %v865_v51 = vadd.f32 %v856_v58, %v832_v10  ;;  %v863_v0 = vadd.f32 %v846_v12, %v830_v30  ;;  %v956_v30 = vpop.permute.xlu1 %955 }
 0x15f   : > { %v864_v3 = vadd.f32 %v851_v35, %v831_v60  ;;  %v866_v13 = vadd.f32 %v861_v4, %v833_v62 }
 0x160   : > { %v813_v7 = vmul.f32 %v811_v8, %v811_v8  ;;  %1427 = vtanh.f32 %v865_v51  ;;  %v914_v8 = vstv %s912_s10 }
 0x161   : > { %1429 = vtanh.f32 %v863_v0  ;;  %v961_v0 = vpop.permute.xlu0 %960 }
 0x162   : > { %v815_v16 = vmul.f32 %v814_v1, %v813_v7  ;;  %1431 = vtanh.f32 %v864_v3 }
 0x163   : > { %1433 = vtanh.f32 %v866_v13 }
 0x164   : > { %v816_v17 = vadd.f32 %v815_v16, %v715_v20 }
 0x16a   : > { %v1428_v63 = vpop.eup %1427 }
 0x16b   : > { %v1430_v48 = vpop.eup %1429  ;;  %v873_v28 = vmul.f32 %v1428_v63, %v1811_v22 }
 0x16c   : > { %v1432_v23 = vpop.eup %1431  ;;  %v871_v24 = vmul.f32 %v1430_v48, %v1805_v5 }
 0x16d   : > { %v872_v61 = vmul.f32 %v1432_v23, %v1807_v15  ;;  %v1434_v27 = vpop.eup %1433 }
 0x16e   : > { %v874_v32 = vmul.f32 %v1434_v27, %v1814_v26 }
 0x16f   : > { %v875_v29 = vadd.f32 %v872_v61, %v871_v24 }
 0x171   : > { %v876_v31 = vadd.f32 %v875_v29, %v873_v28 }
 0x173   : > { %v877_v33 = vadd.f32 %v876_v31, %v874_v32 }
 0x175   : > { %v878_v34 = vrot.slane %v877_v33, 4 }
 0x177   : > { %v879_v2 = vadd.f32 %v878_v34, %v877_v33 }
 0x179   : > { %v880_v20 = vrot.slane %v879_v2, 2 }
 0x17b   : > { %v881_v37 = vadd.f32 %v880_v20, %v879_v2 }
 0x17d   : > { %v882_v38 = vrot.slane %v881_v37, 1 }
 0x17f   : > { %v883_v41 = vadd.f32 %v882_v38, %v881_v37  ;;  %v985_v38 = vstv %s919_s25 }
 0x181   : > { %v884_v44 = vadd.f32 %v883_v41, %v1819_v39 }
 0x183   : > { %v886_v46 = vmul.f32 %v885_v42, %v884_v44 }
 0x185   : > { %v887_v47 = vadd.f32 %v886_v46, %v808_v53 }
 0x187   : > { %v908_v50 = vadd.f32 %v906_v45, %v887_v47  ;;  %v1047_v45 = vpop.permute.xlu1 %1046 }
 0x189   : > { %v909_v12 = vmul.f32 0.1, %v908_v50  ;;  %v928_v43 = vrot.slane %v908_v50, %v1790_v9 }
 0x18b   : > { %v910_v35 = vadd.f32 %v909_v12, %v884_v44  ;;  %v930_v11 = vmul.f32 %v928_v43, %v1794_v14  ;;  %v932_v54 = vmul.f32 %v928_v43, %v1792_v19  ;;  %v1234_v56 = vsel %vm1233_vm3, %v1232_v57, %v928_v43 }
 0x18c   : > { %v931_v10 = vmul.f32 %v928_v43, %v1799_v18  ;;  %v933_v58 = vmul.f32 %v928_v43, %v1797_v55 }
 0x18d   : > { %v911_v53 = vmul.f32 0.70710677, %v910_v35  ;;  %v965_v60 = vadd.f32 %v956_v30, %v932_v54  ;;  %v963_v62 = vadd.f32 %v946_v49, %v930_v11  ;;  %v1057_v11 = vpop.permute.xlu1 %1056 }
 0x18e   : > { %v964_v51 = vadd.f32 %v951_v25, %v931_v10  ;;  %v966_v3 = vadd.f32 %v961_v0, %v933_v58 }
 0x18f   : > { %v913_v1 = vmul.f32 %v911_v53, %v911_v53  ;;  %1435 = vtanh.f32 %v965_v60  ;;  %v1015_v53 = vstv %s1013_s24 }
 0x190   : > { %1437 = vtanh.f32 %v963_v62 }
 0x191   : > { %v915_v4 = vmul.f32 %v914_v8, %v913_v1  ;;  %1439 = vtanh.f32 %v964_v51 }
 0x192   : > { %1441 = vtanh.f32 %v966_v3 }
 0x193   : > { %v916_v7 = vadd.f32 %v915_v4, %v816_v17  ;;  %v992_v17 = vcombine.high %v1722_v52, %v1722_v52  ;;  %v1052_v52 = vpop.permute.xlu0 %1051 }
 0x195   : > { %v999_v34 = vrot.slane %v992_v17, %v1846_v36 }
 0x197   : > { %v1000_v21 = vcombine.high %v999_v34, %v999_v34  ;;  %v1062_v62 = vpop.permute.xlu0 %1061 }
 0x199   : > { %v1436_v57 = vpop.eup %1435  ;;  %v1007_v41 = vrot.slane %v1000_v21, %v1846_v36 }
 0x19a   : > { %v1438_v13 = vpop.eup %1437  ;;  %v973_v24 = vmul.f32 %v1436_v57, %v1811_v22 }
 0x19b   : > { %v1440_v16 = vpop.eup %1439  ;;  %v971_v63 = vmul.f32 %v1438_v13, %v1805_v5 }
 0x19c   : > { %v972_v48 = vmul.f32 %v1440_v16, %v1807_v15  ;;  %v1442_v23 = vpop.eup %1441 }
 0x19d   : > { %v974_v28 = vmul.f32 %v1442_v23, %v1814_v26 }
 0x19e   : > { %v975_v61 = vadd.f32 %v972_v48, %v971_v63 }
 0x1a0   : > { %v976_v27 = vadd.f32 %v975_v61, %v973_v24 }
 0x1a2   : > { %v977_v29 = vadd.f32 %v976_v27, %v974_v28 }
 0x1a4   : > { %v978_v31 = vrot.slane %v977_v29, 4 }
 0x1a6   : > { %v979_v32 = vadd.f32 %v978_v31, %v977_v29 }
 0x1a8   : > { %v980_v33 = vrot.slane %v979_v32, 2 }
 0x1aa   : > { %v981_v2 = vadd.f32 %v980_v33, %v979_v32 }
 0x1ac   : > { %v982_v20 = vrot.slane %v981_v2, 1 }
 0x1ae   : > { %v983_v37 = vadd.f32 %v982_v20, %v981_v2  ;;  %v1086_v2 = vstv %s1020_s12 }
 0x1b0   : > { %v984_v40 = vadd.f32 %v983_v37, %v1819_v39 }
 0x1b2   : > { %v986_v42 = vmul.f32 %v985_v38, %v984_v40 }
 0x1b4   : > { %v987_v44 = vadd.f32 %v986_v42, %v908_v50 }
 0x1b6   : > { %v1009_v46 = vadd.f32 %v1007_v41, %v987_v44 }
 0x1b8   : > { %v1010_v47 = vmul.f32 0.1, %v1009_v46  ;;  %v1029_v49 = vrot.slane %v1009_v46, %v1790_v9 }
 0x1ba   : > { %v1011_v25 = vadd.f32 %v1010_v47, %v984_v40  ;;  %v1031_v12 = vmul.f32 %v1029_v49, %v1794_v14  ;;  %v1033_v43 = vmul.f32 %v1029_v49, %v1792_v19  ;;  %v1236_v35 = vsel %vm1235_vm4, %v1234_v56, %v1029_v49  ;;  %v1148_v40 = vpop.permute.xlu1 %1147 }
 0x1bb   : > { %v1032_v54 = vmul.f32 %v1029_v49, %v1799_v18  ;;  %v1034_v30 = vmul.f32 %v1029_v49, %v1797_v55 }
 0x1bc   : > { %v1012_v50 = vmul.f32 0.70710677, %v1011_v25  ;;  %v1066_v10 = vadd.f32 %v1057_v11, %v1033_v43  ;;  %v1064_v58 = vadd.f32 %v1047_v45, %v1031_v12 }
 0x1bd   : > { %v1065_v60 = vadd.f32 %v1052_v52, %v1032_v54  ;;  %v1067_v51 = vadd.f32 %v1062_v62, %v1034_v30  ;;  %v1116_v30 = vstv %s1114_s13 }
 0x1be   : > { %v1014_v8 = vmul.f32 %v1012_v50, %v1012_v50  ;;  %1443 = vtanh.f32 %v1066_v10  ;;  %v1158_v25 = vpop.permute.xlu1 %1157 }
 0x1bf   : > { %1445 = vtanh.f32 %v1064_v58 }
 0x1c0   : > { %v1016_v0 = vmul.f32 %v1015_v53, %v1014_v8  ;;  %1447 = vtanh.f32 %v1065_v60 }
 0x1c1   : > { %1449 = vtanh.f32 %v1067_v51 }
 0x1c2   : > { %v1017_v1 = vadd.f32 %v1016_v0, %v916_v7  ;;  %v1093_v7 = vcombine.high %v1736_v59, %v1736_v59  ;;  %v1153_v59 = vpop.permute.xlu0 %1152 }
 0x1c4   : > { %v1100_v31 = vrot.slane %v1093_v7, %v1846_v36 }
 0x1c6   : > { %v1107_v33 = vrot.slane %v1100_v31, %v1846_v36  ;;  %v1163_v10 = vpop.permute.xlu0 %1162 }
 0x1c8   : > { %v1444_v56 = vpop.eup %1443  ;;  %v1108_v21 = vcombine.high %v1107_v33, %v1107_v33  ;;  %v1218_v33 = vstv %s1216_s29 }
 0x1c9   : > { %v1446_v3 = vpop.eup %1445  ;;  %v1074_v63 = vmul.f32 %v1444_v56, %v1811_v22 }
 0x1ca   : > { %v1448_v4 = vpop.eup %1447  ;;  %v1072_v57 = vmul.f32 %v1446_v3, %v1805_v5 }
 0x1cb   : > { %v1073_v13 = vmul.f32 %v1448_v4, %v1807_v15  ;;  %v1450_v16 = vpop.eup %1449  ;;  %v1194_v4 = vcombine.high %v1750_v6, %v1750_v6 }
 0x1cc   : > { %v1075_v24 = vmul.f32 %v1450_v16, %v1814_v26 }
 0x1cd   : > { %v1076_v48 = vadd.f32 %v1073_v13, %v1072_v57  ;;  %v1201_v13 = vrot.slane %v1194_v4, %v1846_v36 }
 0x1cf   : > { %v1077_v23 = vadd.f32 %v1076_v48, %v1074_v63  ;;  %v1202_v48 = vcombine.high %v1201_v13, %v1201_v13 }
 0x1d1   : > { %v1078_v61 = vadd.f32 %v1077_v23, %v1075_v24  ;;  %v1187_v24 = vstv %s1121_s15 }
 0x1d3   : > { %v1079_v27 = vrot.slane %v1078_v61, 4 }
 0x1d5   : > { %v1080_v28 = vadd.f32 %v1079_v27, %v1078_v61 }
 0x1d7   : > { %v1081_v29 = vrot.slane %v1080_v28, 2 }
 0x1d9   : > { %v1082_v17 = vadd.f32 %v1081_v29, %v1080_v28 }
 0x1db   : > { %v1083_v32 = vrot.slane %v1082_v17, 1 }
 0x1dd   : > { %v1084_v34 = vadd.f32 %v1083_v32, %v1082_v17 }
 0x1df   : > { %v1085_v20 = vadd.f32 %v1084_v34, %v1819_v39 }
 0x1e1   : > { %v1087_v37 = vmul.f32 %v1086_v2, %v1085_v20 }
 0x1e3   : > { %v1088_v38 = vadd.f32 %v1087_v37, %v1009_v46 }
 0x1e5   : > { %v1110_v41 = vadd.f32 %v1108_v21, %v1088_v38 }
 0x1e7   : > { %v1111_v42 = vmul.f32 0.1, %v1110_v41  ;;  %v1130_v44 = vrot.slane %v1110_v41, %v1790_v9 }
 0x1e9   : > { %v1112_v45 = vadd.f32 %v1111_v42, %v1085_v20  ;;  %v1132_v52 = vmul.f32 %v1130_v44, %v1794_v14  ;;  %v1134_v47 = vmul.f32 %v1130_v44, %v1792_v19  ;;  %v1238_v49 = vsel %vm1237_vm5, %v1236_v35, %v1130_v44 }
 0x1ea   : > { %v1133_v12 = vmul.f32 %v1130_v44, %v1799_v18  ;;  %v1135_v43 = vmul.f32 %v1130_v44, %v1797_v55 }
 0x1eb   : > { %v1113_v46 = vmul.f32 0.70710677, %v1112_v45  ;;  %v1167_v11 = vadd.f32 %v1158_v25, %v1134_v47  ;;  %v1165_v54 = vadd.f32 %v1148_v40, %v1132_v52 }
 0x1ec   : > { %v1166_v50 = vadd.f32 %v1153_v59, %v1133_v12  ;;  %v1168_v53 = vadd.f32 %v1163_v10, %v1135_v43 }
 0x1ed   : > { %v1115_v58 = vmul.f32 %v1113_v46, %v1113_v46  ;;  %1451 = vtanh.f32 %v1167_v11 }
 0x1ee   : > { %1453 = vtanh.f32 %v1165_v54 }
 0x1ef   : > { %v1117_v60 = vmul.f32 %v1116_v30, %v1115_v58  ;;  %1455 = vtanh.f32 %v1166_v50 }
 0x1f0   : > { %1457 = vtanh.f32 %v1168_v53 }
 0x1f1   : > { %v1118_v14 = vadd.f32 %v1117_v60, %v1017_v1 }
 0x1f7   : > { %v1452_v19 = vpop.eup %1451 }
 0x1f8   : > { %v1454_v35 = vpop.eup %1453  ;;  %v1175_v51 = vmul.f32 %v1452_v19, %v1811_v22  ;;  %v1209_v22 = vrot.slane %v1202_v48, %v1846_v36 }
 0x1f9   : > { %v1456_v62 = vpop.eup %1455  ;;  %v1173_v55 = vmul.f32 %v1454_v35, %v1805_v5 }
 0x1fa   : > { %v1174_v18 = vmul.f32 %v1456_v62, %v1807_v15  ;;  %v1458_v8 = vpop.eup %1457  ;;  %v1210_v61 = vcombine.high %v1209_v22, %v1209_v22 }
 0x1fb   : > { %v1176_v3 = vmul.f32 %v1458_v8, %v1814_v26 }
 0x1fc   : > { %v1177_v0 = vadd.f32 %v1174_v18, %v1173_v55 }
 0x1fe   : > { %v1178_v56 = vadd.f32 %v1177_v0, %v1175_v51 }
 0x200   : > { %v1179_v1 = vadd.f32 %v1178_v56, %v1176_v3 }
 0x202   : > { %v1180_v57 = vrot.slane %v1179_v1, 4 }
 0x204   : > { %v1181_v16 = vadd.f32 %v1180_v57, %v1179_v1 }
 0x206   : > { %v1182_v63 = vrot.slane %v1181_v16, 2 }
 0x208   : > { %v1183_v5 = vadd.f32 %v1182_v63, %v1181_v16 }
 0x20a   : > { %v1184_v15 = vrot.slane %v1183_v5, 1 }
 0x20c   : > { %v1185_v23 = vadd.f32 %v1184_v15, %v1183_v5 }
 0x20e   : > { %v1186_v26 = vadd.f32 %v1185_v23, %v1819_v39 }
 0x210   : > { %v1188_v6 = vmul.f32 %v1187_v24, %v1186_v26 }
 0x212   : > { %v1189_v27 = vadd.f32 %v1188_v6, %v1110_v41 }
 0x214   : > { %v1212_v7 = vadd.f32 %v1210_v61, %v1189_v27 }
 0x216   : > { %v1213_v28 = vmul.f32 0.1, %v1212_v7  ;;  %v1225_v29 = vrot.slane %v1212_v7, %v1790_v9  ;;  %1242 = vst [vmem:[#allocation2] sm:$0x1] %v1212_v7 }
 0x218   : > { %v1214_v31 = vadd.f32 %v1213_v28, %v1186_v26  ;;  %v1240_v17 = vsel %vm1239_vm6, %v1238_v49, %v1225_v29 }
 0x219   : > { %1241 = vst [vmem:[%s1560_s17] sm:$0xff] %v1240_v17 }
 0x21a   : > { %v1215_v32 = vmul.f32 0.70710677, %v1214_v31 }
 0x21c   : > { %v1217_v36 = vmul.f32 %v1215_v32, %v1215_v32 }
 0x21e   : > { %v1219_v34 = vmul.f32 %v1218_v33, %v1217_v36 }
 0x220   : > { %v1220_v2 = vadd.f32 %v1219_v34, %v1118_v14 }
 0x222   : > { %1243 = vst [vmem:[%s1974_s8] sm:$0x1] %v1220_v2 }
 0x223 PF: > { %s21_s9 = sadd.s32 1, %s1481_s9   ;;  %s1982_s29 = smov %s1477_s30 }
 0x224   : > { %p18_p0 = scmp.ge.s32.totalorder %s21_s9, 15   ;;  %s1983_s30 = smov %s1985_s6 }
 0x226   :  { %20 = sbr.rel (!%p18_p0) target bundleno = 3 (0x3), region = 97 }

</bundles_post_ra>
